<compile_context>
chip_gen: v6e
topology: v6e:2x2x1
jax: 0.10.0
libtpu: 0.0.40
codegen_flags: <defaults>
</compile_context>

<pallas_src>
import jax
import jax.numpy as jnp
from jax.experimental import pallas as pl
from jax.experimental.pallas import tpu as pltpu

NUM_CLASS = 7
D = 256 * 9          # 2304, per-branch feature dim
H = 128              # hidden dim of the gating / fusion MLPs
OUT_PAD = 128        # lane-padded fc2 output width


def _round_up(x, m):
    return ((x + m - 1) // m) * m


def _default_tile_b():
    """Batch-tile size: smaller on 64 MiB-VMEM chips (v7x), larger on v5e/v6e."""
    try:
        info = pltpu.get_tpu_info()
        vmem = getattr(info, "vmem_capacity_bytes", None)
        if vmem is not None and vmem <= (64 << 20):
            return 512
        return 1024
    except Exception:
        return 512


def _fusion_kernel(face_ref, ctx_ref,
                   w_face_ref, w_ctx_ref,
                   bf1_ref, bc1_ref, bfc1_ref,
                   wf2_ref, bf2_ref, wc2_ref, bc2_ref,
                   wfc2_ref, bfc2_ref,
                   out_ref):
    face = face_ref[...]                      # (TB, 2304) bf16
    ctx = ctx_ref[...]                        # (TB, 2304) bf16

    # One fused N=256 matmul per branch: [:, :H] is the gating hidden,
    # [:, H:] is this branch's (unscaled) half of the fc1 pre-activation.
    u = jnp.dot(face, w_face_ref[...], preferred_element_type=jnp.float32)  # (TB, 256)
    v = jnp.dot(ctx, w_ctx_ref[...], preferred_element_type=jnp.float32)    # (TB, 256)

    u_gate, u_fc1 = u[:, :H], u[:, H:]        # 128-lane split -> tile-aligned slices
    v_gate, v_fc1 = v[:, :H], v[:, H:]

    # Gating branch: lambda = relu(x @ W1 + b1) @ w2 + b2, with the N=1 matmul done
    # as a VPU multiply + lane reduce (no MXU round trip for a single column).
    lf = jnp.maximum(u_gate + bf1_ref[...], 0.0)                                # (TB, 128)
    lc = jnp.maximum(v_gate + bc1_ref[...], 0.0)                                # (TB, 128)
    lam_f = jnp.sum(lf * wf2_ref[...], axis=-1, keepdims=True) + bf2_ref[...]   # (TB, 1)
    lam_c = jnp.sum(lc * wc2_ref[...], axis=-1, keepdims=True) + bc2_ref[...]   # (TB, 1)

    # 2-way softmax over [lambda_f, lambda_c] collapsed to a sigmoid:
    #   w_f = 1 / (1 + exp(lam_c - lam_f)),  w_c = 1 - w_f.
    # exp saturation (-> 0 or inf) yields the correct limits 1 / 0 in f32.
    e = jnp.exp(lam_c - lam_f)                                   # EUP
    w_f = pl.reciprocal(1.0 + e, approx=False)                   # (TB, 1)

    # fc1 on concat([face * w_f, ctx * w_c]) == w_f * u_fc1 + w_c * v_fc1
    #                                        == v_fc1 + w_f * (u_fc1 - v_fc1).
    # dropout1 / dropout2 are identity in eval mode.
    h = jnp.maximum(v_fc1 + w_f * (u_fc1 - v_fc1) + bfc1_ref[...], 0.0)         # (TB, 128)

    # fc2 (lane-padded to 128 outputs for an unmasked, lane-dense store).
    out_ref[...] = (jnp.dot(h, wfc2_ref[...], preferred_element_type=jnp.float32)
                    + bfc2_ref[...])                                             # (TB, 128)


def fusion_network_forward(face, context, params, *, tile_b=None):
    """face, context: (B, 256, 3, 3) float32. Returns (B, NUM_CLASS) float32 logits."""
    B = face.shape[0]
    face_flat = face.reshape(B, -1)
    ctx_flat = context.reshape(B, -1)
    assert face_flat.shape[1] == D and ctx_flat.shape[1] == D

    (wf1, bf1, wf2, bf2, wc1, bc1, wc2, bc2, wfc1, bfc1, wfc2, bfc2) = params

    # Fused big weights (bf16): [gating hidden | this branch's half of fc1].
    w_face = jnp.concatenate([wf1, wfc1[:D, :]], axis=1).astype(jnp.bfloat16)  # (2304, 256)
    w_ctx = jnp.concatenate([wc1, wfc1[D:, :]], axis=1).astype(jnp.bfloat16)   # (2304, 256)

    # Gating second-layer weights as rows for the VPU reduce path.
    wf2_row = wf2.reshape(1, H).astype(jnp.float32)
    wc2_row = wc2.reshape(1, H).astype(jnp.float32)

    # Lane-pad fc2 to 128 outputs (zero columns beyond NUM_CLASS).
    wfc2_pad = jnp.zeros((H, OUT_PAD), jnp.float32).at[:, :NUM_CLASS].set(wfc2)
    bfc2_pad = jnp.zeros((1, OUT_PAD), jnp.float32).at[:, :NUM_CLASS].set(
        bfc2.reshape(1, NUM_CLASS))

    bf1 = bf1.reshape(1, H).astype(jnp.float32)
    bc1 = bc1.reshape(1, H).astype(jnp.float32)
    bfc1 = bfc1.reshape(1, H).astype(jnp.float32)
    bf2 = bf2.reshape(1, 1).astype(jnp.float32)
    bc2 = bc2.reshape(1, 1).astype(jnp.float32)

    # Batch tiling (sublane-aligned); pad B up to a multiple of the tile.
    if tile_b is None:
        tile_b = _default_tile_b()
    TB = min(tile_b, _round_up(max(B, 1), 8))
    B_pad = _round_up(B, TB)
    face_b = face_flat.astype(jnp.bfloat16)
    ctx_b = ctx_flat.astype(jnp.bfloat16)
    if B_pad != B:
        face_b = jnp.pad(face_b, ((0, B_pad - B), (0, 0)))
        ctx_b = jnp.pad(ctx_b, ((0, B_pad - B), (0, 0)))

    args = (face_b, ctx_b,
            w_face, w_ctx,
            bf1, bc1, bfc1,
            wf2_row, bf2, wc2_row, bc2,
            wfc2_pad, bfc2_pad)

    batch_spec = lambda a: pl.BlockSpec((TB, a.shape[1]), lambda i: (i, 0))
    resident_spec = lambda a: pl.BlockSpec(a.shape, lambda i: (0, 0))
    in_specs = [batch_spec(face_b), batch_spec(ctx_b)] + [resident_spec(a) for a in args[2:]]
    out_spec = pl.BlockSpec((TB, OUT_PAD), lambda i: (i, 0))

    out_full = pl.pallas_call(
        _fusion_kernel,
        out_shape=jax.ShapeDtypeStruct((B_pad, OUT_PAD), jnp.float32),
        grid=(B_pad // TB,),
        in_specs=in_specs,
        out_specs=out_spec,
        compiler_params=pltpu.CompilerParams(
            dimension_semantics=("parallel",),
            vmem_limit_bytes=48 << 20),
    )(*args)

    return out_full[:B, :NUM_CLASS]


def init_params(key):
    """Deterministic parameter init matching the nn.Linear shapes (transposed)."""
    def linear(key, fan_in, fan_out):
        kw, kb = jax.random.split(key)
        bound = 1.0 / jnp.sqrt(float(fan_in))
        w = jax.random.uniform(kw, (fan_in, fan_out), jnp.float32, -bound, bound)
        b = jax.random.uniform(kb, (1, fan_out), jnp.float32, -bound, bound)
        return w, b

    keys = jax.random.split(key, 6)
    wf1, bf1 = linear(keys[0], D, H)            # face_1
    wf2, bf2 = linear(keys[1], H, 1)            # face_2
    wc1, bc1 = linear(keys[2], D, H)            # context_1
    wc2, bc2 = linear(keys[3], H, 1)            # context_2
    wfc1, bfc1 = linear(keys[4], 2 * D, H)      # fc1
    wfc2, bfc2 = linear(keys[5], H, NUM_CLASS)  # fc2
    return (wf1, bf1, wf2, bf2, wc1, bc1, wc2, bc2, wfc1, bfc1, wfc2, bfc2)


def reference_forward(face, context, params):
    """Pure-JAX reference mirroring the PyTorch forward (eval mode).

    The activations and the large (2304-wide) weights are rounded through bf16 to
    mirror the kernel's bf16 MXU inputs; all other math is done in f32.
    """
    (wf1, bf1, wf2, bf2, wc1, bc1, wc2, bc2, wfc1, bfc1, wfc2, bfc2) = params
    B = face.shape[0]
    rb = lambda x: x.astype(jnp.bfloat16).astype(jnp.float32)
    f = rb(face.reshape(B, -1))
    c = rb(context.reshape(B, -1))
    lf = jax.nn.relu(f @ rb(wf1) + bf1)
    lc = jax.nn.relu(c @ rb(wc1) + bc1)
    lam_f = lf @ wf2 + bf2
    lam_c = lc @ wc2 + bc2
    w = jax.nn.softmax(jnp.concatenate([lam_f, lam_c], axis=-1), axis=1)
    fs = f * w[:, 0:1]
    cs = c * w[:, 1:2]
    feats = jnp.concatenate([fs, cs], axis=-1)
    h = jax.nn.relu(feats @ rb(wfc1) + bfc1)
    return h @ wfc2 + bfc2


if __name__ == "__main__":
    key = jax.random.PRNGKey(0)
    k_face, k_ctx, k_params = jax.random.split(key, 3)

    B = 2
    face = jax.random.normal(k_face, (B, 256, 3, 3), jnp.float32)     # NCHW
    context = jax.random.normal(k_ctx, (B, 256, 3, 3), jnp.float32)   # NCHW
    params = init_params(k_params)

    out = fusion_network_forward(face, context, params)
    out = jax.block_until_ready(out)

    ref = reference_forward(face, context, params)
    assert out.shape == (B, NUM_CLASS)
    assert jnp.allclose(out, ref, atol=2e-3, rtol=2e-3), (out, ref)

    print("KERNEL_OK")
</pallas_src>

<mosaic_0001>
module attributes {stable_mosaic.version = 11 : i64} {
  func.func @_fusion_kernel(%arg0: i32, %arg1: memref<8x2304xbf16, #tpu.memory_space<vmem>>, %arg2: memref<8x2304xbf16, #tpu.memory_space<vmem>>, %arg3: memref<2304x256xbf16, #tpu.memory_space<vmem>>, %arg4: memref<2304x256xbf16, #tpu.memory_space<vmem>>, %arg5: memref<1x128xf32, #tpu.memory_space<vmem>>, %arg6: memref<1x128xf32, #tpu.memory_space<vmem>>, %arg7: memref<1x128xf32, #tpu.memory_space<vmem>>, %arg8: memref<1x128xf32, #tpu.memory_space<vmem>>, %arg9: memref<1x1xf32, #tpu.memory_space<vmem>>, %arg10: memref<1x128xf32, #tpu.memory_space<vmem>>, %arg11: memref<1x1xf32, #tpu.memory_space<vmem>>, %arg12: memref<128x128xf32, #tpu.memory_space<vmem>>, %arg13: memref<1x128xf32, #tpu.memory_space<vmem>>, %arg14: memref<8x128xf32, #tpu.memory_space<vmem>>) attributes {dimension_semantics = [#tpu.dimension_semantics<parallel>], iteration_bounds = array<i64: 1>, scalar_prefetch = 0 : i64, scratch_operands = 0 : i64, tpu.core_type = #tpu.core_type<tc>, window_params = [{transform_indices = @transform_0, window_bounds = array<i64: 8, 2304>}, {transform_indices = @transform_1, window_bounds = array<i64: 8, 2304>}, {pipeline_mode = #tpu.pipeline_mode<synchronous>, transform_indices = @transform_2, window_bounds = array<i64: 2304, 256>}, {pipeline_mode = #tpu.pipeline_mode<synchronous>, transform_indices = @transform_3, window_bounds = array<i64: 2304, 256>}, {pipeline_mode = #tpu.pipeline_mode<synchronous>, transform_indices = @transform_4, window_bounds = array<i64: 1, 128>}, {pipeline_mode = #tpu.pipeline_mode<synchronous>, transform_indices = @transform_5, window_bounds = array<i64: 1, 128>}, {pipeline_mode = #tpu.pipeline_mode<synchronous>, transform_indices = @transform_6, window_bounds = array<i64: 1, 128>}, {pipeline_mode = #tpu.pipeline_mode<synchronous>, transform_indices = @transform_7, window_bounds = array<i64: 1, 128>}, {pipeline_mode = #tpu.pipeline_mode<synchronous>, transform_indices = @transform_8, window_bounds = array<i64: 1, 1>}, {pipeline_mode = #tpu.pipeline_mode<synchronous>, transform_indices = @transform_9, window_bounds = array<i64: 1, 128>}, {pipeline_mode = #tpu.pipeline_mode<synchronous>, transform_indices = @transform_10, window_bounds = array<i64: 1, 1>}, {pipeline_mode = #tpu.pipeline_mode<synchronous>, transform_indices = @transform_11, window_bounds = array<i64: 128, 128>}, {pipeline_mode = #tpu.pipeline_mode<synchronous>, transform_indices = @transform_12, window_bounds = array<i64: 1, 128>}, {transform_indices = @transform_13, window_bounds = array<i64: 8, 128>}]} {
    %c0 = arith.constant 0 : index
    %c0_0 = arith.constant 0 : index
    %0 = vector.load %arg1[%c0, %c0_0] : memref<8x2304xbf16, #tpu.memory_space<vmem>>, vector<8x2304xbf16>
    %c0_1 = arith.constant 0 : index
    %c0_2 = arith.constant 0 : index
    %1 = vector.load %arg2[%c0_1, %c0_2] : memref<8x2304xbf16, #tpu.memory_space<vmem>>, vector<8x2304xbf16>
    %c0_3 = arith.constant 0 : index
    %c0_4 = arith.constant 0 : index
    %2 = vector.load %arg3[%c0_3, %c0_4] : memref<2304x256xbf16, #tpu.memory_space<vmem>>, vector<2304x256xbf16>
    %cst = arith.constant dense<0.000000e+00> : vector<8x256xf32>
    %3 = tpu.matmul %0, %2, %cst {dimension_numbers = #tpu.dot_dimension_numbers<[1], [0], [0], [1], [0, 0, 1, 1], [], []>} : vector<8x2304xbf16>, vector<2304x256xbf16>, vector<8x256xf32> -> vector<8x256xf32>
    %c0_5 = arith.constant 0 : index
    %c0_6 = arith.constant 0 : index
    %4 = vector.load %arg4[%c0_5, %c0_6] : memref<2304x256xbf16, #tpu.memory_space<vmem>>, vector<2304x256xbf16>
    %cst_7 = arith.constant dense<0.000000e+00> : vector<8x256xf32>
    %5 = tpu.matmul %1, %4, %cst_7 {dimension_numbers = #tpu.dot_dimension_numbers<[1], [0], [0], [1], [0, 0, 1, 1], [], []>} : vector<8x2304xbf16>, vector<2304x256xbf16>, vector<8x256xf32> -> vector<8x256xf32>
    %6 = vector.extract_strided_slice %3 {offsets = [0, 0], sizes = [8, 128], strides = [1, 1]} : vector<8x256xf32> to vector<8x128xf32>
    %7 = vector.extract_strided_slice %3 {offsets = [0, 128], sizes = [8, 128], strides = [1, 1]} : vector<8x256xf32> to vector<8x128xf32>
    %8 = vector.extract_strided_slice %5 {offsets = [0, 0], sizes = [8, 128], strides = [1, 1]} : vector<8x256xf32> to vector<8x128xf32>
    %9 = vector.extract_strided_slice %5 {offsets = [0, 128], sizes = [8, 128], strides = [1, 1]} : vector<8x256xf32> to vector<8x128xf32>
    %c0_8 = arith.constant 0 : index
    %c0_9 = arith.constant 0 : index
    %10 = vector.load %arg5[%c0_8, %c0_9] : memref<1x128xf32, #tpu.memory_space<vmem>>, vector<1x128xf32>
    %11 = vector.broadcast %10 : vector<1x128xf32> to vector<8x128xf32>
    %12 = arith.addf %6, %11 : vector<8x128xf32>
    %cst_10 = arith.constant 0.000000e+00 : f32
    %13 = vector.broadcast %cst_10 : f32 to vector<8x128xf32>
    %14 = arith.maximumf %12, %13 : vector<8x128xf32>
    %c0_11 = arith.constant 0 : index
    %c0_12 = arith.constant 0 : index
    %15 = vector.load %arg6[%c0_11, %c0_12] : memref<1x128xf32, #tpu.memory_space<vmem>>, vector<1x128xf32>
    %16 = vector.broadcast %15 : vector<1x128xf32> to vector<8x128xf32>
    %17 = arith.addf %8, %16 : vector<8x128xf32>
    %cst_13 = arith.constant 0.000000e+00 : f32
    %18 = vector.broadcast %cst_13 : f32 to vector<8x128xf32>
    %19 = arith.maximumf %17, %18 : vector<8x128xf32>
    %c0_14 = arith.constant 0 : index
    %c0_15 = arith.constant 0 : index
    %20 = vector.load %arg8[%c0_14, %c0_15] : memref<1x128xf32, #tpu.memory_space<vmem>>, vector<1x128xf32>
    %21 = vector.broadcast %20 : vector<1x128xf32> to vector<8x128xf32>
    %22 = arith.mulf %14, %21 : vector<8x128xf32>
    %cst_16 = arith.constant dense<0.000000e+00> : vector<8xf32>
    %23 = vector.multi_reduction <add>, %22, %cst_16 [1] : vector<8x128xf32> to vector<8xf32>
    %24 = vector.shape_cast %23 : vector<8xf32> to vector<8x1xf32>
    %c0_17 = arith.constant 0 : index
    %c0_18 = arith.constant 0 : index
    %25 = vector.load %arg9[%c0_17, %c0_18] : memref<1x1xf32, #tpu.memory_space<vmem>>, vector<1x1xf32>
    %26 = vector.broadcast %25 : vector<1x1xf32> to vector<8x1xf32>
    %27 = arith.addf %24, %26 : vector<8x1xf32>
    %c0_19 = arith.constant 0 : index
    %c0_20 = arith.constant 0 : index
    %28 = vector.load %arg10[%c0_19, %c0_20] : memref<1x128xf32, #tpu.memory_space<vmem>>, vector<1x128xf32>
    %29 = vector.broadcast %28 : vector<1x128xf32> to vector<8x128xf32>
    %30 = arith.mulf %19, %29 : vector<8x128xf32>
    %cst_21 = arith.constant dense<0.000000e+00> : vector<8xf32>
    %31 = vector.multi_reduction <add>, %30, %cst_21 [1] : vector<8x128xf32> to vector<8xf32>
    %32 = vector.shape_cast %31 : vector<8xf32> to vector<8x1xf32>
    %c0_22 = arith.constant 0 : index
    %c0_23 = arith.constant 0 : index
    %33 = vector.load %arg11[%c0_22, %c0_23] : memref<1x1xf32, #tpu.memory_space<vmem>>, vector<1x1xf32>
    %34 = vector.broadcast %33 : vector<1x1xf32> to vector<8x1xf32>
    %35 = arith.addf %32, %34 : vector<8x1xf32>
    %36 = arith.subf %35, %27 : vector<8x1xf32>
    %37 = math.exp %36 : vector<8x1xf32>
    %cst_24 = arith.constant 1.000000e+00 : f32
    %38 = vector.broadcast %cst_24 : f32 to vector<8x1xf32>
    %39 = arith.addf %38, %37 : vector<8x1xf32>
    %40 = tpu.reciprocal %39 : vector<8x1xf32> -> vector<8x1xf32>
    %41 = arith.subf %7, %9 : vector<8x128xf32>
    %42 = vector.broadcast %40 : vector<8x1xf32> to vector<8x128xf32>
    %43 = arith.mulf %42, %41 : vector<8x128xf32>
    %44 = arith.addf %9, %43 : vector<8x128xf32>
    %c0_25 = arith.constant 0 : index
    %c0_26 = arith.constant 0 : index
    %45 = vector.load %arg7[%c0_25, %c0_26] : memref<1x128xf32, #tpu.memory_space<vmem>>, vector<1x128xf32>
    %46 = vector.broadcast %45 : vector<1x128xf32> to vector<8x128xf32>
    %47 = arith.addf %44, %46 : vector<8x128xf32>
    %cst_27 = arith.constant 0.000000e+00 : f32
    %48 = vector.broadcast %cst_27 : f32 to vector<8x128xf32>
    %49 = arith.maximumf %47, %48 : vector<8x128xf32>
    %c0_28 = arith.constant 0 : index
    %c0_29 = arith.constant 0 : index
    %50 = vector.load %arg12[%c0_28, %c0_29] : memref<128x128xf32, #tpu.memory_space<vmem>>, vector<128x128xf32>
    %cst_30 = arith.constant dense<0.000000e+00> : vector<8x128xf32>
    %51 = tpu.matmul %49, %50, %cst_30 {dimension_numbers = #tpu.dot_dimension_numbers<[1], [0], [0], [1], [0, 0, 1, 1], [], []>} : vector<8x128xf32>, vector<128x128xf32>, vector<8x128xf32> -> vector<8x128xf32>
    %c0_31 = arith.constant 0 : index
    %c0_32 = arith.constant 0 : index
    %52 = vector.load %arg13[%c0_31, %c0_32] : memref<1x128xf32, #tpu.memory_space<vmem>>, vector<1x128xf32>
    %53 = vector.broadcast %52 : vector<1x128xf32> to vector<8x128xf32>
    %54 = arith.addf %51, %53 : vector<8x128xf32>
    %c0_33 = arith.constant 0 : index
    %c0_34 = arith.constant 0 : index
    %55 = vector.load %arg14[%c0_33, %c0_34] : memref<8x128xf32, #tpu.memory_space<vmem>>, vector<8x128xf32>
    tpu.vector_store %arg14[%c0_33, %c0_34], %54 {strides = array<i32>} : memref<8x128xf32, #tpu.memory_space<vmem>>, vector<8x128xf32>,
    return
  }
  func.func @transform_0(%arg0: i32) -> (i32, i32) {
    %c0_i32 = arith.constant 0 : i32
    %c0_i32_0 = arith.constant 0 : i32
    return %arg0, %c0_i32 : i32, i32
  }
  func.func @transform_1(%arg0: i32) -> (i32, i32) {
    %c0_i32 = arith.constant 0 : i32
    %c0_i32_0 = arith.constant 0 : i32
    return %arg0, %c0_i32 : i32, i32
  }
  func.func @transform_2(%arg0: i32) -> (i32, i32) {
    %c0_i32 = arith.constant 0 : i32
    %c0_i32_0 = arith.constant 0 : i32
    %c0_i32_1 = arith.constant 0 : i32
    return %c0_i32, %c0_i32_0 : i32, i32
  }
  func.func @transform_3(%arg0: i32) -> (i32, i32) {
    %c0_i32 = arith.constant 0 : i32
    %c0_i32_0 = arith.constant 0 : i32
    %c0_i32_1 = arith.constant 0 : i32
    return %c0_i32, %c0_i32_0 : i32, i32
  }
  func.func @transform_4(%arg0: i32) -> (i32, i32) {
    %c0_i32 = arith.constant 0 : i32
    %c0_i32_0 = arith.constant 0 : i32
    %c0_i32_1 = arith.constant 0 : i32
    return %c0_i32, %c0_i32_0 : i32, i32
  }
  func.func @transform_5(%arg0: i32) -> (i32, i32) {
    %c0_i32 = arith.constant 0 : i32
    %c0_i32_0 = arith.constant 0 : i32
    %c0_i32_1 = arith.constant 0 : i32
    return %c0_i32, %c0_i32_0 : i32, i32
  }
  func.func @transform_6(%arg0: i32) -> (i32, i32) {
    %c0_i32 = arith.constant 0 : i32
    %c0_i32_0 = arith.constant 0 : i32
    %c0_i32_1 = arith.constant 0 : i32
    return %c0_i32, %c0_i32_0 : i32, i32
  }
  func.func @transform_7(%arg0: i32) -> (i32, i32) {
    %c0_i32 = arith.constant 0 : i32
    %c0_i32_0 = arith.constant 0 : i32
    %c0_i32_1 = arith.constant 0 : i32
    return %c0_i32, %c0_i32_0 : i32, i32
  }
  func.func @transform_8(%arg0: i32) -> (i32, i32) {
    %c0_i32 = arith.constant 0 : i32
    %c0_i32_0 = arith.constant 0 : i32
    %c0_i32_1 = arith.constant 0 : i32
    return %c0_i32, %c0_i32_0 : i32, i32
  }
  func.func @transform_9(%arg0: i32) -> (i32, i32) {
    %c0_i32 = arith.constant 0 : i32
    %c0_i32_0 = arith.constant 0 : i32
    %c0_i32_1 = arith.constant 0 : i32
    return %c0_i32, %c0_i32_0 : i32, i32
  }
  func.func @transform_10(%arg0: i32) -> (i32, i32) {
    %c0_i32 = arith.constant 0 : i32
    %c0_i32_0 = arith.constant 0 : i32
    %c0_i32_1 = arith.constant 0 : i32
    return %c0_i32, %c0_i32_0 : i32, i32
  }
  func.func @transform_11(%arg0: i32) -> (i32, i32) {
    %c0_i32 = arith.constant 0 : i32
    %c0_i32_0 = arith.constant 0 : i32
    %c0_i32_1 = arith.constant 0 : i32
    return %c0_i32, %c0_i32_0 : i32, i32
  }
  func.func @transform_12(%arg0: i32) -> (i32, i32) {
    %c0_i32 = arith.constant 0 : i32
    %c0_i32_0 = arith.constant 0 : i32
    %c0_i32_1 = arith.constant 0 : i32
    return %c0_i32, %c0_i32_0 : i32, i32
  }
  func.func @transform_13(%arg0: i32) -> (i32, i32) {
    %c0_i32 = arith.constant 0 : i32
    %c0_i32_0 = arith.constant 0 : i32
    return %arg0, %c0_i32 : i32, i32
  }
}

</mosaic_0001>

<bundles_post_ra>
// kernel: tpu_custom_call.1
= control target key start
LH: loop header
LB: loop body
LE: loop exit
PB: predicated region body
PF: predicated region fallthrough
CT: control target
= control target key end

     0   :  { %s6836_s0 = inlined_call_operand.hbm [shape: bf16[8,2304], index: 0, kind: input, shape index: {}]   ;;  %s6837_s1 = inlined_call_operand.hbm [shape: bf16[8,2304], index: 1, kind: input, shape index: {}]   ;;  %s6838_s2 = inlined_call_operand.hbm [shape: bf16[2304,256], index: 2, kind: input, shape index: {}]   ;;  %s6839_s3 = inlined_call_operand.hbm [shape: bf16[2304,256], index: 3, kind: input, shape index: {}]   ;;  %s6840_s4 = inlined_call_operand.hbm [shape: f32[1,128], index: 4, kind: input, shape index: {}]   ;;  %s6841_s5 = inlined_call_operand.hbm [shape: f32[1,128], index: 5, kind: input, shape index: {}]   ;;  %s6842_s6 = inlined_call_operand.hbm [shape: f32[1,128], index: 6, kind: input, shape index: {}]   ;;  %s6843_s7 = inlined_call_operand.hbm [shape: f32[1,128], index: 7, kind: input, shape index: {}]   ;;  %s6844_s8 = inlined_call_operand.<no memory space> [shape: f32[1,1], index: 8, kind: input, shape index: {}]   ;;  %s6845_s9 = inlined_call_operand.hbm [shape: f32[1,128], index: 9, kind: input, shape index: {}]   ;;  %s6846_s11 = inlined_call_operand.hbm [shape: f32[128,128], index: 11, kind: input, shape index: {}]   ;;  %s6847_s12 = inlined_call_operand.hbm [shape: f32[1,128], index: 12, kind: input, shape index: {}]   ;;  %s6848_s13 = inlined_call_operand.hbm [shape: f32[8,128], index: 13, kind: output, shape index: {}]   ;;  %s6849_s10 = inlined_call_operand.<no memory space> [shape: f32[1,1], index: 10, kind: input, shape index: {}]  }
   0x1   :  { %v18_v0 = vstv %s6844_s8  ;;  %v20_v1 = vstv %s6849_s10 }
   0x2   :  { %19 = vst [vmem:[#allocation2] sm:$0x1] %v18_v0  ;;  %21 = vst [vmem:[#allocation3] sm:$0x1] %v20_v1 }
   0x3   :  { %22 = vsyncpa [#allocation5], 0 }
   0x4   :  { %23 = vsyncpa [#allocation8], 0 }
   0x5   :  { %24 = vsyncpa [#allocation11], 0 }
   0x6   :  { %25 = vsyncpa [#allocation14], 0 }
   0x7   :  { %26 = vsyncpa [#allocation17], 0 }
   0x8   :  { %27 = vsyncpa [#allocation20], 0 }
   0x9   :  { %28 = vsyncpa [#allocation6], 0  ;;  %s6559_s29 = smov [#allocation7]  }
   0xa   :  { %s45_s30 = sshll.u32 %s6559_s29, 4  ;;  %s46_s30 = int_to_ptr.vmem [resolvable:$true] %s45_s30 }
   0xb   :  { %s6313_s14 = scalar_lea.vmem %s46_s30, 1152  ;;  %p6318_p1 = scmp.lt.s32.totalorder %s46_s30, %s46_s30 }
   0xc   :  { %p6314_p0 = scmp.ne.s32.totalorder %s46_s30, %s6313_s14  ;;  %p6319_p2 = scmp.lt.s32.totalorder %s6313_s14, %s6313_s14 }
   0xe   :  { %p6320_p3 = por %p6319_p2, %p6318_p1 }
  0x10   :  { %p6321_p4 = pnand %p6320_p3, %p6314_p0 }
  0x12   :  { %6324 = shalt.err (!%p6321_p4)
}
  0x13   :  { %48 = dma.hbm_to_vmem [thread:$0]  %s6837_s1, 1152, %s46_s30, [#allocation8]  }
  0x14   :  { %s6560_s15 = smov [#allocation10]   ;;  %s6561_s17 = smov [#allocation13]  }
  0x15   :  { %s66_s16 = sshll.u32 %s6560_s15, 4  ;;  %s89_s18 = sshll.u32 %s6561_s17, 4  ;;  %s67_s16 = int_to_ptr.vmem [resolvable:$true] %s66_s16  ;;  %s90_s18 = int_to_ptr.vmem [resolvable:$true] %s89_s18 }
  0x16   :  { %s6333_s19 = scalar_lea.vmem %s67_s16, 36864  ;;  %p6338_p6 = scmp.lt.s32.totalorder %s67_s16, %s67_s16 }
  0x17   :  { %p6334_p5 = scmp.ne.s32.totalorder %s67_s16, %s6333_s19  ;;  %p6339_p7 = scmp.lt.s32.totalorder %s6333_s19, %s6333_s19 }
  0x19   :  { %p6340_p8 = por %p6339_p7, %p6338_p6 }
  0x1b   :  { %p6341_p9 = pnand %p6340_p8, %p6334_p5 }
  0x1d   :  { %6344 = shalt.err (!%p6341_p9)
}
  0x1e   :  { %s6562_s20 = smov 128   ;;  %s6563_s21 = smov 8  }
  0x1f   :  { %72 = dma.hbm_to_vmem [thread:$0]  %s6839_s3, 36864, %s67_s16, [#allocation11], %s6562_s20, %s6562_s20, %s6563_s21  }
  0x20   :  { %s6353_s1 = scalar_lea.vmem %s90_s18, 16  ;;  %s6357_s24 = scalar_lea.vmem %s90_s18, 32 }
  0x21   :  { %p6354_p10 = scmp.ne.s32.totalorder %s90_s18, %s6353_s1  ;;  %p6358_p11 = scmp.lt.s32.totalorder %s90_s18, %s90_s18 }
  0x22   :  { %p6359_p12 = scmp.lt.s32.totalorder %s6357_s24, %s6353_s1 }
  0x24   :  { %p6360_p13 = por %p6359_p12, %p6358_p11 }
  0x26   :  { %p6361_p0 = pnand %p6360_p13, %p6354_p10 }
  0x28   :  { %6364 = shalt.err (!%p6361_p0)
}
  0x29   :  { %92 = dma.hbm_to_vmem [thread:$0]  %s6841_s5, 16, %s90_s18, [#allocation14]  }
  0x2a   :  { %s6564_s27 = smov [#allocation16]   ;;  %s6565_s29 = smov [#allocation19]  }
  0x2b   :  { %s109_s28 = sshll.u32 %s6564_s27, 4  ;;  %s132_s30 = sshll.u32 %s6565_s29, 4  ;;  %s110_s28 = int_to_ptr.vmem [resolvable:$true] %s109_s28  ;;  %s133_s30 = int_to_ptr.vmem [resolvable:$true] %s132_s30 }
  0x2c   :  { %s6373_s14 = scalar_lea.vmem %s110_s28, 16  ;;  %s6377_s3 = scalar_lea.vmem %s110_s28, 32 }
  0x2d   :  { %p6374_p1 = scmp.ne.s32.totalorder %s110_s28, %s6373_s14  ;;  %p6378_p2 = scmp.lt.s32.totalorder %s110_s28, %s110_s28 }
  0x2e   :  { %p6379_p3 = scmp.lt.s32.totalorder %s6377_s3, %s6373_s14 }
  0x30   :  { %p6380_p4 = por %p6379_p3, %p6378_p2 }
  0x32   :  { %p6381_p5 = pnand %p6380_p4, %p6374_p1 }
  0x34   :  { %6384 = shalt.err (!%p6381_p5)
}
  0x35   :  { %112 = dma.hbm_to_vmem [thread:$0]  %s6843_s7, 16, %s110_s28, [#allocation17]  }
  0x36   :  { %s6393_s15 = scalar_lea.vmem %s133_s30, 2048  ;;  %p6398_p7 = scmp.lt.s32.totalorder %s133_s30, %s133_s30 }
  0x37   :  { %p6394_p6 = scmp.ne.s32.totalorder %s133_s30, %s6393_s15  ;;  %p6399_p8 = scmp.lt.s32.totalorder %s6393_s15, %s6393_s15 }
  0x39   :  { %p6400_p9 = por %p6399_p8, %p6398_p7 }
  0x3b   :  { %p6401_p10 = pnand %p6400_p9, %p6394_p6 }
  0x3d   :  { %6404 = shalt.err (!%p6401_p10)
}
  0x3e   :  { %138 = dma.hbm_to_vmem [thread:$0]  %s6846_s11, 2048, %s133_s30, [#allocation20], %s6562_s20, %s6562_s20, %s6563_s21  }
  0x3f   :  { %s6566_s17 = smov [#allocation4]   ;;  %s6567_s19 = smov [#allocation9]  }
  0x40   :  { %s35_s18 = sshll.u32 %s6566_s17, 4  ;;  %s54_s7 = sshll.u32 %s6567_s19, 4  ;;  %s36_s18 = int_to_ptr.vmem [resolvable:$true] %s35_s18  ;;  %s55_s7 = int_to_ptr.vmem [resolvable:$true] %s54_s7 }
  0x41   :  { %s6413_s22 = scalar_lea.vmem %s36_s18, 1152  ;;  %p6418_p12 = scmp.lt.s32.totalorder %s36_s18, %s36_s18 }
  0x42   :  { %p6414_p11 = scmp.ne.s32.totalorder %s36_s18, %s6413_s22  ;;  %p6419_p13 = scmp.lt.s32.totalorder %s6413_s22, %s6413_s22 }
  0x44   :  { %p6420_p0 = por %p6419_p13, %p6418_p12 }
  0x46   :  { %p6421_p1 = pnand %p6420_p0, %p6414_p11 }
  0x48   :  { %6424 = shalt.err (!%p6421_p1)
}
  0x49   :  { %38 = dma.hbm_to_vmem [thread:$0]  %s6836_s0, 1152, %s36_s18, [#allocation5]  }
  0x4a   :  { %s6433_s24 = scalar_lea.vmem %s55_s7, 36864  ;;  %p6438_p3 = scmp.lt.s32.totalorder %s55_s7, %s55_s7 }
  0x4b   :  { %p6434_p2 = scmp.ne.s32.totalorder %s55_s7, %s6433_s24  ;;  %p6439_p4 = scmp.lt.s32.totalorder %s6433_s24, %s6433_s24 }
  0x4d   :  { %p6440_p5 = por %p6439_p4, %p6438_p3 }
  0x4f   :  { %p6441_p6 = pnand %p6440_p5, %p6434_p2 }
  0x51   :  { %6444 = shalt.err (!%p6441_p6)
}
  0x52   :  { %60 = dma.hbm_to_vmem [thread:$0]  %s6838_s2, 36864, %s55_s7, [#allocation8], %s6562_s20, %s6562_s20, %s6563_s21  }
  0x53   :  { %s6568_s26 = smov [#allocation12]   ;;  %s6569_s28 = smov [#allocation15]  }
  0x54   :  { %s79_s27 = sshll.u32 %s6568_s26, 4  ;;  %s99_s0 = sshll.u32 %s6569_s28, 4  ;;  %s80_s27 = int_to_ptr.vmem [resolvable:$true] %s79_s27  ;;  %s100_s0 = int_to_ptr.vmem [resolvable:$true] %s99_s0 }
  0x55   :  { %s6453_s29 = scalar_lea.vmem %s80_s27, 16  ;;  %s6457_s30 = scalar_lea.vmem %s80_s27, 32 }
  0x56   :  { %p6454_p7 = scmp.ne.s32.totalorder %s80_s27, %s6453_s29  ;;  %p6458_p8 = scmp.lt.s32.totalorder %s80_s27, %s80_s27 }
  0x57   :  { %p6459_p9 = scmp.lt.s32.totalorder %s6457_s30, %s6453_s29 }
  0x59   :  { %p6460_p10 = por %p6459_p9, %p6458_p8 }
  0x5b   :  { %p6461_p11 = pnand %p6460_p10, %p6454_p7 }
  0x5d   :  { %6464 = shalt.err (!%p6461_p11)
}
  0x5e   :  { %82 = dma.hbm_to_vmem [thread:$0]  %s6840_s4, 16, %s80_s27, [#allocation11]  }
  0x5f   :  { %s6473_s8 = scalar_lea.vmem %s100_s0, 16  ;;  %s6477_s2 = scalar_lea.vmem %s100_s0, 32 }
  0x60   :  { %p6474_p12 = scmp.ne.s32.totalorder %s100_s0, %s6473_s8  ;;  %p6478_p13 = scmp.lt.s32.totalorder %s100_s0, %s100_s0 }
  0x61   :  { %p6479_p0 = scmp.lt.s32.totalorder %s6477_s2, %s6473_s8 }
  0x63   :  { %p6480_p1 = por %p6479_p0, %p6478_p13 }
  0x65   :  { %p6481_p2 = pnand %p6480_p1, %p6474_p12 }
  0x67   :  { %6484 = shalt.err (!%p6481_p2)
}
  0x68   :  { %102 = dma.hbm_to_vmem [thread:$0]  %s6842_s6, 16, %s100_s0, [#allocation14]  }
  0x69   :  { %s6570_s10 = smov [#allocation18]   ;;  %s6571_s5 = smov [#allocation21]  }
  0x6a   :  { %s121_s15 = sshll.u32 %s6570_s10, 4  ;;  %s145_s16 = sshll.u32 %s6571_s5, 4  ;;  %s122_s15 = int_to_ptr.vmem [resolvable:$true] %s121_s15  ;;  %s146_s16 = int_to_ptr.vmem [resolvable:$true] %s145_s16 }
  0x6b   :  { %s6493_s17 = scalar_lea.vmem %s122_s15, 16  ;;  %s6497_s4 = scalar_lea.vmem %s122_s15, 32 }
  0x6c   :  { %p6494_p3 = scmp.ne.s32.totalorder %s122_s15, %s6493_s17  ;;  %p6498_p4 = scmp.lt.s32.totalorder %s122_s15, %s122_s15 }
  0x6d   :  { %p6499_p5 = scmp.lt.s32.totalorder %s6497_s4, %s6493_s17 }
  0x6f   :  { %p6500_p6 = por %p6499_p5, %p6498_p4 }
  0x71   :  { %p6501_p7 = pnand %p6500_p6, %p6494_p3 }
  0x73   :  { %6504 = shalt.err (!%p6501_p7)
}
  0x74   :  { %124 = dma.hbm_to_vmem [thread:$0]  %s6845_s9, 16, %s122_s15, [#allocation17]  }
  0x75   :  { %s6513_s7 = scalar_lea.vmem %s146_s16, 16  ;;  %s6517_s6 = scalar_lea.vmem %s146_s16, 32 }
  0x76   :  { %p6514_p8 = scmp.ne.s32.totalorder %s146_s16, %s6513_s7  ;;  %p6518_p9 = scmp.lt.s32.totalorder %s146_s16, %s146_s16 }
  0x77   :  { %p6519_p10 = scmp.lt.s32.totalorder %s6517_s6, %s6513_s7 }
  0x79   :  { %p6520_p11 = por %p6519_p10, %p6518_p9 }
  0x7b   :  { %p6521_p12 = pnand %p6520_p11, %p6514_p8 }
  0x7d   :  { %6524 = shalt.err (!%p6521_p12)
}
  0x7e   :  { %148 = dma.hbm_to_vmem [thread:$0]  %s6847_s12, 16, %s146_s16, [#allocation20]  }
  0x7f   :  { %6545 = dma.done.wait [#allocation5], 1152  }
  0x80   :  { %6546 = vsyncadd [#allocation5], 4294966144 }
  0x81   :  { %6547 = dma.done.wait [#allocation8], 38016  }
  0x82   :  { %6548 = vsyncadd [#allocation8], 4294929280 }
  0x83   :  { %6549 = dma.done.wait [#allocation11], 36880  }
  0x84   :  { %6550 = vsyncadd [#allocation11], 4294930416 }
  0x85   :  { %6551 = dma.done.wait [#allocation14], 32  }
  0x86   :  { %6552 = vsyncadd [#allocation14], 4294967264 }
  0x87   :  { %6553 = dma.done.wait [#allocation17], 32  }
  0x88   :  { %6554 = vsyncadd [#allocation17], 4294967264 }
  0x89   :  { %6555 = dma.done.wait [#allocation20], 2064  }
  0x8a   :  { %6556 = vsyncadd [#allocation20], 4294965232  ;;  %v5401_v2 = vld [vmem:[#allocation9 + $0x74] ss:$8 sps:$4 sm:$0xff]   ;;  %v5405_v4 = vld [vmem:[#allocation9 + $0x70] ss:$8 sps:$4 sm:$0xff]  }
  0x8b   :  { %v5403_v3 = vld [vmem:[#allocation9 + $0x174] ss:$8 sps:$4 sm:$0xff]   ;;  %1991 = vmatprep.subr.bf16.mxu0 %v5401_v2  ;;  %v5406_v5 = vld [vmem:[#allocation9 + $0x170] ss:$8 sps:$4 sm:$0xff]   ;;  %v5407_v6 = vld [vmem:[#allocation9 + $0x64] ss:$8 sps:$4 sm:$0xff]  }
  0x8c   :  { %2032 = vmatprep.subr.bf16.mxu1 %v5403_v3  ;;  %1992 = vmatpush1.bf16.msra.mxu0 %v5405_v4  ;;  %v5409_v7 = vld [vmem:[#allocation9 + $0x164] ss:$8 sps:$4 sm:$0xff]   ;;  %v5411_v8 = vld [vmem:[#allocation9 + $0x60] ss:$8 sps:$4 sm:$0xff]   ;;  %v5413_v10 = vld [vmem:[#allocation9 + $0x54] ss:$8 sps:$4 sm:$0xff]  }
  0x8d   :  { %2033 = vmatpush1.bf16.msra.mxu1 %v5406_v5  ;;  %1993 = vmatprep.subr.bf16.mxu0 %v5407_v6  ;;  %v5412_v9 = vld [vmem:[#allocation9 + $0x160] ss:$8 sps:$4 sm:$0xff]   ;;  %v5415_v11 = vld [vmem:[#allocation9 + $0x154] ss:$8 sps:$4 sm:$0xff]   ;;  %v5417_v12 = vld [vmem:[#allocation9 + $0x50] ss:$8 sps:$4 sm:$0xff]  }
  0x8e   :  { %2034 = vmatprep.subr.bf16.mxu1 %v5409_v7  ;;  %v5418_v13 = vld [vmem:[#allocation9 + $0x150] ss:$8 sps:$4 sm:$0xff]   ;;  %v5419_v14 = vld [vmem:[#allocation9 + $0x44] ss:$8 sps:$4 sm:$0xff]   ;;  %v5423_v16 = vld [vmem:[#allocation9 + $0x40] ss:$8 sps:$4 sm:$0xff]  }
  0x8f   :  { %v5421_v15 = vld [vmem:[#allocation9 + $0x144] ss:$8 sps:$4 sm:$0xff]   ;;  %v5424_v17 = vld [vmem:[#allocation9 + $0x140] ss:$8 sps:$4 sm:$0xff]   ;;  %v5425_v18 = vld [vmem:[#allocation9 + $0x34] ss:$8 sps:$4 sm:$0xff]  }
  0x90   :  { %1994 = vmatpush1.bf16.msra.mxu0 %v5411_v8  ;;  %v5427_v19 = vld [vmem:[#allocation9 + $0x134] ss:$8 sps:$4 sm:$0xff]   ;;  %v5429_v20 = vld [vmem:[#allocation9 + $0x30] ss:$8 sps:$4 sm:$0xff]   ;;  %v5431_v22 = vld [vmem:[#allocation9 + $0x24] ss:$8 sps:$4 sm:$0xff]  }
  0x91   :  { %2035 = vmatpush1.bf16.msra.mxu1 %v5412_v9  ;;  %1995 = vmatprep.subr.bf16.mxu0 %v5413_v10  ;;  %v5430_v21 = vld [vmem:[#allocation9 + $0x130] ss:$8 sps:$4 sm:$0xff]   ;;  %v5433_v23 = vld [vmem:[#allocation9 + $0x124] ss:$8 sps:$4 sm:$0xff]   ;;  %v5435_v24 = vld [vmem:[#allocation9 + $0x20] ss:$8 sps:$4 sm:$0xff]  }
  0x92   :  { %2036 = vmatprep.subr.bf16.mxu1 %v5415_v11  ;;  %v5436_v25 = vld [vmem:[#allocation9 + $0x120] ss:$8 sps:$4 sm:$0xff]   ;;  %v5437_v26 = vld [vmem:[#allocation9 + $0x14] ss:$8 sps:$4 sm:$0xff]   ;;  %v5441_v28 = vld [vmem:[#allocation9 + $0x10] ss:$8 sps:$4 sm:$0xff]  }
  0x93   :  { %v5439_v27 = vld [vmem:[#allocation9 + $0x114] ss:$8 sps:$4 sm:$0xff]   ;;  %v5442_v29 = vld [vmem:[#allocation9 + $0x110] ss:$8 sps:$4 sm:$0xff]   ;;  %v5443_v30 = vld [vmem:[#allocation9 + $0x4] ss:$8 sps:$4 sm:$0xff]  }
  0x94   :  { %1996 = vmatpush1.bf16.msra.mxu0 %v5417_v12  ;;  %v5445_v31 = vld [vmem:[#allocation9 + $0x104] ss:$8 sps:$4 sm:$0xff]   ;;  %v5447_v32 = vld [vmem:[#allocation9] ss:$8 sps:$4 sm:$0xff]   ;;  %v5449_v34 = vld [vmem:[#allocation9 + $0xf4] ss:$8 sps:$4 sm:$0xff]  }
  0x95   :  { %2037 = vmatpush1.bf16.msra.mxu1 %v5418_v13  ;;  %1997 = vmatprep.subr.bf16.mxu0 %v5419_v14  ;;  %v5448_v33 = vld [vmem:[#allocation9 + $0x100] ss:$8 sps:$4 sm:$0xff]   ;;  %v5451_v35 = vld [vmem:[#allocation9 + $0x1f4] ss:$8 sps:$4 sm:$0xff]   ;;  %v5453_v36 = vld [vmem:[#allocation9 + $0xf0] ss:$8 sps:$4 sm:$0xff]  }
  0x96   :  { %2038 = vmatprep.subr.bf16.mxu1 %v5421_v15  ;;  %v5454_v37 = vld [vmem:[#allocation9 + $0x1f0] ss:$8 sps:$4 sm:$0xff]   ;;  %v5455_v38 = vld [vmem:[#allocation9 + $0xe4] ss:$8 sps:$4 sm:$0xff]   ;;  %v5459_v40 = vld [vmem:[#allocation9 + $0xe0] ss:$8 sps:$4 sm:$0xff]  }
  0x97   :  { %v5457_v39 = vld [vmem:[#allocation9 + $0x1e4] ss:$8 sps:$4 sm:$0xff]   ;;  %v5460_v41 = vld [vmem:[#allocation9 + $0x1e0] ss:$8 sps:$4 sm:$0xff]   ;;  %v5461_v42 = vld [vmem:[#allocation9 + $0xd4] ss:$8 sps:$4 sm:$0xff]  }
  0x98   :  { %1998 = vmatpush1.bf16.msra.mxu0 %v5423_v16  ;;  %v5463_v43 = vld [vmem:[#allocation9 + $0x1d4] ss:$8 sps:$4 sm:$0xff]   ;;  %v5465_v44 = vld [vmem:[#allocation9 + $0xd0] ss:$8 sps:$4 sm:$0xff]   ;;  %v5467_v46 = vld [vmem:[#allocation9 + $0xc4] ss:$8 sps:$4 sm:$0xff]  }
  0x99   :  { %2039 = vmatpush1.bf16.msra.mxu1 %v5424_v17  ;;  %1999 = vmatprep.subr.bf16.mxu0 %v5425_v18  ;;  %v5466_v45 = vld [vmem:[#allocation9 + $0x1d0] ss:$8 sps:$4 sm:$0xff]   ;;  %v5469_v47 = vld [vmem:[#allocation9 + $0x1c4] ss:$8 sps:$4 sm:$0xff]   ;;  %v5471_v51 = vld [vmem:[#allocation9 + $0xc0] ss:$8 sps:$4 sm:$0xff]  }
  0x9a   :  { %2040 = vmatprep.subr.bf16.mxu1 %v5427_v19  ;;  %v182_v48 = vld [vmem:[#allocation4] sm:$0xff]  ;;  %v183_v50 = vld [vmem:[#allocation4 + $0x8] sm:$0xff]  ;;  %v5472_v52 = vld [vmem:[#allocation9 + $0x1c0] ss:$8 sps:$4 sm:$0xff]   ;;  %vm6574_vm0 = vmmov 0   ;;  %s6575_s9 = smov [#allocation22]  }
  0x9b   :  { %v4711_v49 = vcombine.high %v182_v48, %v182_v48  ;;  %v4713_v53 = vcombine.high %v183_v50, %v183_v50  ;;  %v5473_v54 = vld [vmem:[#allocation9 + $0xb4] ss:$8 sps:$4 sm:$0xff]   ;;  %v5477_v56 = vld [vmem:[#allocation9 + $0xb0] ss:$8 sps:$4 sm:$0xff]   ;;  %v5479_v58 = vld [vmem:[#allocation9 + $0xa4] ss:$8 sps:$4 sm:$0xff]   ;;  %v4710_v8 = vcombine.low %v182_v48, %v182_v48  ;;  %v4712_v9 = vcombine.low %v183_v50, %v183_v50 }
  0x9c   :  { %2000 = vmatpush1.bf16.msra.mxu0 %v5429_v20  ;;  %v5475_v55 = vld [vmem:[#allocation9 + $0x1b4] ss:$8 sps:$4 sm:$0xff]   ;;  %v5478_v57 = vld [vmem:[#allocation9 + $0x1b0] ss:$8 sps:$4 sm:$0xff]   ;;  %v5481_v59 = vld [vmem:[#allocation9 + $0x1a4] ss:$8 sps:$4 sm:$0xff]  }
  0x9d   :  { %2041 = vmatpush1.bf16.msra.mxu1 %v5430_v21  ;;  %2001 = vmatprep.subr.bf16.mxu0 %v5431_v22  ;;  %v5483_v60 = vld [vmem:[#allocation9 + $0xa0] ss:$8 sps:$4 sm:$0xff]   ;;  %v5485_v62 = vld [vmem:[#allocation9 + $0x94] ss:$8 sps:$4 sm:$0xff]   ;;  %v5489_v0 = vld [vmem:[#allocation9 + $0x90] ss:$8 sps:$4 sm:$0xff]  }
  0x9e   :  { %2042 = vmatprep.subr.bf16.mxu1 %v5433_v23  ;;  %2023 = vmatprep.mubr.bf16.mxu0 %v4711_v49  ;;  %v5484_v61 = vld [vmem:[#allocation9 + $0x1a0] ss:$8 sps:$4 sm:$0xff]   ;;  %v5487_v63 = vld [vmem:[#allocation9 + $0x194] ss:$8 sps:$4 sm:$0xff]   ;;  %v5490_v1 = vld [vmem:[#allocation9 + $0x190] ss:$8 sps:$4 sm:$0xff]  }
  0x9f   :  { %2064 = vmatprep.mubr.bf16.mxu1 %v4713_v53  ;;  %v5491_v2 = vld [vmem:[#allocation9 + $0x84] ss:$8 sps:$4 sm:$0xff]   ;;  %v5495_v4 = vld [vmem:[#allocation9 + $0x80] ss:$8 sps:$4 sm:$0xff]   ;;  %v5503_v6 = vld [vmem:[#allocation9 + $0x274] ss:$8 sps:$4 sm:$0xff]  }
  0xa0   :  { %2002 = vmatpush1.bf16.msra.mxu0 %v5435_v24  ;;  %v5493_v3 = vld [vmem:[#allocation9 + $0x184] ss:$8 sps:$4 sm:$0xff]   ;;  %v5496_v5 = vld [vmem:[#allocation9 + $0x180] ss:$8 sps:$4 sm:$0xff]   ;;  %v5506_v7 = vld [vmem:[#allocation9 + $0x374] ss:$8 sps:$4 sm:$0xff]  }
  0xa1   :  { %2043 = vmatpush1.bf16.msra.mxu1 %v5436_v25  ;;  %2003 = vmatprep.subr.bf16.mxu0 %v5437_v26  ;;  %v5501_v10 = vld [vmem:[#allocation9 + $0x270] ss:$8 sps:$4 sm:$0xff]   ;;  %v5509_v12 = vld [vmem:[#allocation9 + $0x264] ss:$8 sps:$4 sm:$0xff]   ;;  %v5507_v14 = vld [vmem:[#allocation9 + $0x260] ss:$8 sps:$4 sm:$0xff]  }
  0xa2   :  { %2044 = vmatprep.subr.bf16.mxu1 %v5439_v27  ;;  %v5504_v11 = vld [vmem:[#allocation9 + $0x370] ss:$8 sps:$4 sm:$0xff]   ;;  %v5512_v13 = vld [vmem:[#allocation9 + $0x364] ss:$8 sps:$4 sm:$0xff]   ;;  %v5510_v15 = vld [vmem:[#allocation9 + $0x360] ss:$8 sps:$4 sm:$0xff]  }
  0xa3   :  { %v5515_v16 = vld [vmem:[#allocation9 + $0x254] ss:$8 sps:$4 sm:$0xff]   ;;  %v5513_v18 = vld [vmem:[#allocation9 + $0x250] ss:$8 sps:$4 sm:$0xff]   ;;  %v5521_v20 = vld [vmem:[#allocation9 + $0x244] ss:$8 sps:$4 sm:$0xff]  }
  0xa4   :  { %2004 = vmatpush1.bf16.msra.mxu0 %v5441_v28  ;;  %v5518_v17 = vld [vmem:[#allocation9 + $0x354] ss:$8 sps:$4 sm:$0xff]   ;;  %v5516_v19 = vld [vmem:[#allocation9 + $0x350] ss:$8 sps:$4 sm:$0xff]   ;;  %v5524_v21 = vld [vmem:[#allocation9 + $0x344] ss:$8 sps:$4 sm:$0xff]  }
  0xa5   :  { %2045 = vmatpush1.bf16.msra.mxu1 %v5442_v29  ;;  %2005 = vmatprep.subr.bf16.mxu0 %v5443_v30  ;;  %v5519_v22 = vld [vmem:[#allocation9 + $0x240] ss:$8 sps:$4 sm:$0xff]   ;;  %v5527_v24 = vld [vmem:[#allocation9 + $0x234] ss:$8 sps:$4 sm:$0xff]   ;;  %v5525_v26 = vld [vmem:[#allocation9 + $0x230] ss:$8 sps:$4 sm:$0xff]  }
  0xa6   :  { %2046 = vmatprep.subr.bf16.mxu1 %v5445_v31  ;;  %v5522_v23 = vld [vmem:[#allocation9 + $0x340] ss:$8 sps:$4 sm:$0xff]   ;;  %v5530_v25 = vld [vmem:[#allocation9 + $0x334] ss:$8 sps:$4 sm:$0xff]   ;;  %v5528_v27 = vld [vmem:[#allocation9 + $0x330] ss:$8 sps:$4 sm:$0xff]  }
  0xa7   :  { %v5533_v28 = vld [vmem:[#allocation9 + $0x224] ss:$8 sps:$4 sm:$0xff]   ;;  %v5531_v30 = vld [vmem:[#allocation9 + $0x220] ss:$8 sps:$4 sm:$0xff]   ;;  %v5566_v53 = vld [vmem:[#allocation9 + $0x3d4] ss:$8 sps:$4 sm:$0xff]  }
  0xa8   :  { %2006 = vmatpush1.bf16.msra.mxu0 %v5447_v32  ;;  %v5536_v29 = vld [vmem:[#allocation9 + $0x324] ss:$8 sps:$4 sm:$0xff]   ;;  %v5534_v31 = vld [vmem:[#allocation9 + $0x320] ss:$8 sps:$4 sm:$0xff]   ;;  %v5539_v32 = vld [vmem:[#allocation9 + $0x214] ss:$8 sps:$4 sm:$0xff]  }
  0xa9   :  { %2047 = vmatpush1.bf16.msra.mxu1 %v5448_v33  ;;  %2007 = vmatprep.subr.bf16.mxu0 %v5449_v34  ;;  %v5542_v33 = vld [vmem:[#allocation9 + $0x314] ss:$8 sps:$4 sm:$0xff]   ;;  %v6694_v34 = vld [vmem:[#allocation4 + $0x10] sm:$0xff]  ;;  %s4696_s12 = sshll.u32 %s6575_s9, 4  ;;  %s4697_s12 = int_to_ptr.vmem [resolvable:$true] %s4696_s12 }
  0xaa   :  { %2048 = vmatprep.subr.bf16.mxu1 %v5451_v35  ;;  %v6696_v35 = vld [vmem:[#allocation4 + $0x18] sm:$0xff]  ;;  %s6525_s1 = scalar_lea.vmem %s4697_s12, 128  ;;  %p6530_p0 = scmp.lt.s32.totalorder %s4697_s12, %s4697_s12 }
  0xab   :  { %v5557_v48 = vld [vmem:[#allocation9 + $0x2e4] ss:$8 sps:$4 sm:$0xff]   ;;  %v5555_v50 = vld [vmem:[#allocation9 + $0x2e0] ss:$8 sps:$4 sm:$0xff]   ;;  %p6526_p13 = scmp.ne.s32.totalorder %s4697_s12, %s6525_s1  ;;  %p6531_p1 = scmp.lt.s32.totalorder %s6525_s1, %s6525_s1 }
  0xac   :  { %2008 = vmatpush2.bf16.msra.mxu0 %v5453_v36  ;;  %v5537_v36 = vld [vmem:[#allocation9 + $0x210] ss:$8 sps:$4 sm:$0xff]   ;;  %v5560_v49 = vld [vmem:[#allocation9 + $0x3e4] ss:$8 sps:$4 sm:$0xff]  }
  0xad   :  { %2049 = vmatpush2.bf16.msra.mxu1 %v5454_v37  ;;  %2009 = vmatprep.subr.bf16.mxu0 %v5455_v38  ;;  %v5540_v37 = vld [vmem:[#allocation9 + $0x310] ss:$8 sps:$4 sm:$0xff]   ;;  %v4715_v38 = vcombine.high %v6694_v34, %v6694_v34  ;;  %p6532_p2 = por %p6531_p1, %p6530_p0 }
  0xae   :  { %2050 = vmatprep.subr.bf16.mxu1 %v5457_v39  ;;  %v4717_v39 = vcombine.high %v6696_v35, %v6696_v35 }
  0xaf   :  { %p6533_p3 = pnand %p6532_p2, %p6526_p13 }
  0xb0   :  { %2010 = vmatpush2.bf16.msra.mxu0 %v5459_v40  ;;  %v5545_v40 = vld [vmem:[#allocation9 + $0x204] ss:$8 sps:$4 sm:$0xff]  }
  0xb1   :  { %2051 = vmatpush2.bf16.msra.mxu1 %v5460_v41  ;;  %2011 = vmatprep.subr.bf16.mxu0 %v5461_v42  ;;  %v5548_v41 = vld [vmem:[#allocation9 + $0x304] ss:$8 sps:$4 sm:$0xff]   ;;  %v5543_v42 = vld [vmem:[#allocation9 + $0x200] ss:$8 sps:$4 sm:$0xff]  }
  0xb2   :  { %2052 = vmatprep.subr.bf16.mxu1 %v5463_v43  ;;  %v5546_v43 = vld [vmem:[#allocation9 + $0x300] ss:$8 sps:$4 sm:$0xff]  }
  0xb4   :  { %2012 = vmatpush2.bf16.msra.mxu0 %v5465_v44  ;;  %v5551_v44 = vld [vmem:[#allocation9 + $0x2f4] ss:$8 sps:$4 sm:$0xff]  }
  0xb5   :  { %2053 = vmatpush2.bf16.msra.mxu1 %v5466_v45  ;;  %2013 = vmatprep.subr.bf16.mxu0 %v5467_v46  ;;  %v5554_v45 = vld [vmem:[#allocation9 + $0x3f4] ss:$8 sps:$4 sm:$0xff]   ;;  %v5549_v46 = vld [vmem:[#allocation9 + $0x2f0] ss:$8 sps:$4 sm:$0xff]  }
  0xb6   :  { %2054 = vmatprep.subr.bf16.mxu1 %v5469_v47  ;;  %v5552_v47 = vld [vmem:[#allocation9 + $0x3f0] ss:$8 sps:$4 sm:$0xff]  }
  0xb8   :  { %2014 = vmatpush2.bf16.msra.mxu0 %v5471_v51  ;;  %v5558_v51 = vld [vmem:[#allocation9 + $0x3e0] ss:$8 sps:$4 sm:$0xff]  }
  0xb9   :  { %2055 = vmatpush2.bf16.msra.mxu1 %v5472_v52  ;;  %2015 = vmatprep.subr.bf16.mxu0 %v5473_v54  ;;  %v5563_v52 = vld [vmem:[#allocation9 + $0x2d4] ss:$8 sps:$4 sm:$0xff]   ;;  %v5561_v54 = vld [vmem:[#allocation9 + $0x2d0] ss:$8 sps:$4 sm:$0xff]  }
  0xba   :  { %2056 = vmatprep.subr.bf16.mxu1 %v5475_v55  ;;  %v5564_v55 = vld [vmem:[#allocation9 + $0x3d0] ss:$8 sps:$4 sm:$0xff]  }
  0xbc   :  { %2016 = vmatpush2.bf16.msra.mxu0 %v5477_v56  ;;  %v5569_v56 = vld [vmem:[#allocation9 + $0x2c4] ss:$8 sps:$4 sm:$0xff]  }
  0xbd   :  { %2057 = vmatpush2.bf16.msra.mxu1 %v5478_v57  ;;  %2017 = vmatprep.subr.bf16.mxu0 %v5479_v58  ;;  %v5572_v57 = vld [vmem:[#allocation9 + $0x3c4] ss:$8 sps:$4 sm:$0xff]   ;;  %v5567_v58 = vld [vmem:[#allocation9 + $0x2c0] ss:$8 sps:$4 sm:$0xff]  }
  0xbe   :  { %2058 = vmatprep.subr.bf16.mxu1 %v5481_v59  ;;  %v5570_v59 = vld [vmem:[#allocation9 + $0x3c0] ss:$8 sps:$4 sm:$0xff]  }
  0xc0   :  { %2018 = vmatpush2.bf16.msra.mxu0 %v5483_v60  ;;  %v5575_v60 = vld [vmem:[#allocation9 + $0x2b4] ss:$8 sps:$4 sm:$0xff]  }
  0xc1   :  { %2059 = vmatpush2.bf16.msra.mxu1 %v5484_v61  ;;  %2019 = vmatprep.subr.bf16.mxu0 %v5485_v62  ;;  %v5578_v61 = vld [vmem:[#allocation9 + $0x3b4] ss:$8 sps:$4 sm:$0xff]   ;;  %v5573_v62 = vld [vmem:[#allocation9 + $0x2b0] ss:$8 sps:$4 sm:$0xff]  }
  0xc2   :  { %2060 = vmatprep.subr.bf16.mxu1 %v5487_v63  ;;  %v5576_v63 = vld [vmem:[#allocation9 + $0x3b0] ss:$8 sps:$4 sm:$0xff]  }
  0xc4   :  { %2020 = vmatpush2.bf16.msra.mxu0 %v5489_v0  ;;  %v5581_v0 = vld [vmem:[#allocation9 + $0x2a4] ss:$8 sps:$4 sm:$0xff]  }
  0xc5   :  { %2061 = vmatpush2.bf16.msra.mxu1 %v5490_v1  ;;  %2021 = vmatprep.subr.bf16.mxu0 %v5491_v2  ;;  %v5584_v1 = vld [vmem:[#allocation9 + $0x3a4] ss:$8 sps:$4 sm:$0xff]   ;;  %v5579_v2 = vld [vmem:[#allocation9 + $0x2a0] ss:$8 sps:$4 sm:$0xff]  }
  0xc6   :  { %2062 = vmatprep.subr.bf16.mxu1 %v5493_v3  ;;  %v5582_v3 = vld [vmem:[#allocation9 + $0x3a0] ss:$8 sps:$4 sm:$0xff]  }
  0xc8   :  { %2022 = vmatpush2.bf16.msra.mxu0 %v5495_v4  ;;  %v5587_v4 = vld [vmem:[#allocation9 + $0x294] ss:$8 sps:$4 sm:$0xff]  }
  0xc9   :  { %2063 = vmatpush2.bf16.msra.mxu1 %v5496_v5  ;;  %2073 = vmatprep.subr.bf16.mxu0 %v5503_v6  ;;  %v5590_v5 = vld [vmem:[#allocation9 + $0x394] ss:$8 sps:$4 sm:$0xff]   ;;  %v5585_v6 = vld [vmem:[#allocation9 + $0x290] ss:$8 sps:$4 sm:$0xff]  }
  0xca   :  { %2114 = vmatprep.subr.bf16.mxu1 %v5506_v7  ;;  %v5588_v7 = vld [vmem:[#allocation9 + $0x390] ss:$8 sps:$4 sm:$0xff]  }
  0xcb   :  { %2024 = vmatmul.mubr.bf16.vlgmr.msra.gmra.mxu0 %v4710_v8  ;;  %v5593_v8 = vld [vmem:[#allocation9 + $0x284] ss:$8 sps:$4 sm:$0xff]  }
  0xcc   :  { %2065 = vmatmul.mubr.bf16.vlgmr.msra.gmra.mxu1 %v4712_v9  ;;  %2074 = vmatpush1.bf16.msra.mxu0 %v5501_v10  ;;  %v5596_v9 = vld [vmem:[#allocation9 + $0x384] ss:$8 sps:$4 sm:$0xff]   ;;  %v5591_v10 = vld [vmem:[#allocation9 + $0x280] ss:$8 sps:$4 sm:$0xff]  }
  0xcd   :  { %2115 = vmatpush1.bf16.msra.mxu1 %v5504_v11  ;;  %2075 = vmatprep.subr.bf16.mxu0 %v5509_v12  ;;  %v5594_v11 = vld [vmem:[#allocation9 + $0x380] ss:$8 sps:$4 sm:$0xff]   ;;  %v5603_v12 = vld [vmem:[#allocation9 + $0x474] ss:$8 sps:$4 sm:$0xff]  }
  0xce   :  { %2116 = vmatprep.subr.bf16.mxu1 %v5512_v13  ;;  %2105 = vmatprep.mubr.bf16.mxu0 %v4715_v38  ;;  %v5606_v13 = vld [vmem:[#allocation9 + $0x574] ss:$8 sps:$4 sm:$0xff]   ;;  %v5633_v38 = vld [vmem:[#allocation9 + $0x424] ss:$8 sps:$4 sm:$0xff]  }
  0xcf   :  { %2146 = vmatprep.mubr.bf16.mxu1 %v4717_v39  ;;  %v5636_v39 = vld [vmem:[#allocation9 + $0x524] ss:$8 sps:$4 sm:$0xff]  }
  0xd0   :  { %2076 = vmatpush1.bf16.msra.mxu0 %v5507_v14  ;;  %v4714_v14 = vcombine.low %v6694_v34, %v6694_v34  ;;  %v5627_v34 = vld [vmem:[#allocation9 + $0x434] ss:$8 sps:$4 sm:$0xff]  }
  0xd1   :  { %2117 = vmatpush1.bf16.msra.mxu1 %v5510_v15  ;;  %2077 = vmatprep.subr.bf16.mxu0 %v5515_v16  ;;  %v4716_v15 = vcombine.low %v6696_v35, %v6696_v35  ;;  %v5601_v16 = vld [vmem:[#allocation9 + $0x470] ss:$8 sps:$4 sm:$0xff]   ;;  %v5630_v35 = vld [vmem:[#allocation9 + $0x534] ss:$8 sps:$4 sm:$0xff]  }
  0xd2   :  { %2118 = vmatprep.subr.bf16.mxu1 %v5518_v17  ;;  %v5604_v17 = vld [vmem:[#allocation9 + $0x570] ss:$8 sps:$4 sm:$0xff]  }
  0xd4   :  { %2078 = vmatpush1.bf16.msra.mxu0 %v5513_v18  ;;  %v5609_v18 = vld [vmem:[#allocation9 + $0x464] ss:$8 sps:$4 sm:$0xff]  }
  0xd5   :  { %2119 = vmatpush1.bf16.msra.mxu1 %v5516_v19  ;;  %2079 = vmatprep.subr.bf16.mxu0 %v5521_v20  ;;  %v5612_v19 = vld [vmem:[#allocation9 + $0x564] ss:$8 sps:$4 sm:$0xff]   ;;  %v6706_v20 = vld [vmem:[#allocation4 + $0x20] sm:$0xff] }
  0xd6   :  { %2120 = vmatprep.subr.bf16.mxu1 %v5524_v21  ;;  %v6708_v21 = vld [vmem:[#allocation4 + $0x28] sm:$0xff] }
  0xd8   :  { %2080 = vmatpush1.bf16.msra.mxu0 %v5519_v22  ;;  %v4719_v22 = vcombine.high %v6706_v20, %v6706_v20 }
  0xd9   :  { %2121 = vmatpush1.bf16.msra.mxu1 %v5522_v23  ;;  %2081 = vmatprep.subr.bf16.mxu0 %v5527_v24  ;;  %v4721_v23 = vcombine.high %v6708_v21, %v6708_v21  ;;  %v5607_v24 = vld [vmem:[#allocation9 + $0x460] ss:$8 sps:$4 sm:$0xff]  }
  0xda   :  { %2122 = vmatprep.subr.bf16.mxu1 %v5530_v25  ;;  %v5610_v25 = vld [vmem:[#allocation9 + $0x560] ss:$8 sps:$4 sm:$0xff]  }
  0xdc   :  { %2082 = vmatpush1.bf16.msra.mxu0 %v5525_v26  ;;  %v5615_v26 = vld [vmem:[#allocation9 + $0x454] ss:$8 sps:$4 sm:$0xff]  }
  0xdd   :  { %2123 = vmatpush1.bf16.msra.mxu1 %v5528_v27  ;;  %2083 = vmatprep.subr.bf16.mxu0 %v5533_v28  ;;  %v5618_v27 = vld [vmem:[#allocation9 + $0x554] ss:$8 sps:$4 sm:$0xff]   ;;  %v5613_v28 = vld [vmem:[#allocation9 + $0x450] ss:$8 sps:$4 sm:$0xff]  }
  0xde   :  { %2124 = vmatprep.subr.bf16.mxu1 %v5536_v29  ;;  %v5616_v29 = vld [vmem:[#allocation9 + $0x550] ss:$8 sps:$4 sm:$0xff]  }
  0xe0   :  { %2084 = vmatpush1.bf16.msra.mxu0 %v5531_v30  ;;  %v5621_v30 = vld [vmem:[#allocation9 + $0x444] ss:$8 sps:$4 sm:$0xff]  }
  0xe1   :  { %2125 = vmatpush1.bf16.msra.mxu1 %v5534_v31  ;;  %2085 = vmatprep.subr.bf16.mxu0 %v5539_v32  ;;  %v5624_v31 = vld [vmem:[#allocation9 + $0x544] ss:$8 sps:$4 sm:$0xff]   ;;  %v5619_v32 = vld [vmem:[#allocation9 + $0x440] ss:$8 sps:$4 sm:$0xff]  }
  0xe2   :  { %2126 = vmatprep.subr.bf16.mxu1 %v5542_v33  ;;  %v5622_v33 = vld [vmem:[#allocation9 + $0x540] ss:$8 sps:$4 sm:$0xff]  }
  0xe4   :  { %2086 = vmatpush1.bf16.msra.mxu0 %v5537_v36  ;;  %v5625_v36 = vld [vmem:[#allocation9 + $0x430] ss:$8 sps:$4 sm:$0xff]  }
  0xe5   :  { %2127 = vmatpush1.bf16.msra.mxu1 %v5540_v37  ;;  %2087 = vmatprep.subr.bf16.mxu0 %v5545_v40  ;;  %v5628_v37 = vld [vmem:[#allocation9 + $0x530] ss:$8 sps:$4 sm:$0xff]   ;;  %v5631_v40 = vld [vmem:[#allocation9 + $0x420] ss:$8 sps:$4 sm:$0xff]  }
  0xe6   :  { %2128 = vmatprep.subr.bf16.mxu1 %v5548_v41  ;;  %v5634_v41 = vld [vmem:[#allocation9 + $0x520] ss:$8 sps:$4 sm:$0xff]  }
  0xe8   :  { %2088 = vmatpush1.bf16.msra.mxu0 %v5543_v42  ;;  %v5639_v42 = vld [vmem:[#allocation9 + $0x414] ss:$8 sps:$4 sm:$0xff]  }
  0xe9   :  { %2129 = vmatpush1.bf16.msra.mxu1 %v5546_v43  ;;  %2089 = vmatprep.subr.bf16.mxu0 %v5551_v44  ;;  %v5642_v43 = vld [vmem:[#allocation9 + $0x514] ss:$8 sps:$4 sm:$0xff]   ;;  %v5637_v44 = vld [vmem:[#allocation9 + $0x410] ss:$8 sps:$4 sm:$0xff]  }
  0xea   :  { %2130 = vmatprep.subr.bf16.mxu1 %v5554_v45  ;;  %v5640_v45 = vld [vmem:[#allocation9 + $0x510] ss:$8 sps:$4 sm:$0xff]  }
  0xec   :  { %2090 = vmatpush2.bf16.msra.mxu0 %v5549_v46  ;;  %v5645_v46 = vld [vmem:[#allocation9 + $0x404] ss:$8 sps:$4 sm:$0xff]  }
  0xed   :  { %2131 = vmatpush2.bf16.msra.mxu1 %v5552_v47  ;;  %2091 = vmatprep.subr.bf16.mxu0 %v5557_v48  ;;  %v5648_v47 = vld [vmem:[#allocation9 + $0x504] ss:$8 sps:$4 sm:$0xff]   ;;  %v5643_v48 = vld [vmem:[#allocation9 + $0x400] ss:$8 sps:$4 sm:$0xff]  }
  0xee   :  { %2132 = vmatprep.subr.bf16.mxu1 %v5560_v49  ;;  %v5646_v49 = vld [vmem:[#allocation9 + $0x500] ss:$8 sps:$4 sm:$0xff]  }
  0xf0   :  { %2092 = vmatpush2.bf16.msra.mxu0 %v5555_v50  ;;  %v5651_v50 = vld [vmem:[#allocation9 + $0x4f4] ss:$8 sps:$4 sm:$0xff]  }
  0xf1   :  { %2133 = vmatpush2.bf16.msra.mxu1 %v5558_v51  ;;  %2093 = vmatprep.subr.bf16.mxu0 %v5563_v52  ;;  %v5654_v51 = vld [vmem:[#allocation9 + $0x5f4] ss:$8 sps:$4 sm:$0xff]   ;;  %v5649_v52 = vld [vmem:[#allocation9 + $0x4f0] ss:$8 sps:$4 sm:$0xff]  }
  0xf2   :  { %2134 = vmatprep.subr.bf16.mxu1 %v5566_v53  ;;  %v5652_v53 = vld [vmem:[#allocation9 + $0x5f0] ss:$8 sps:$4 sm:$0xff]  }
  0xf4   :  { %2094 = vmatpush2.bf16.msra.mxu0 %v5561_v54  ;;  %v5657_v54 = vld [vmem:[#allocation9 + $0x4e4] ss:$8 sps:$4 sm:$0xff]  }
  0xf5   :  { %2135 = vmatpush2.bf16.msra.mxu1 %v5564_v55  ;;  %2095 = vmatprep.subr.bf16.mxu0 %v5569_v56  ;;  %v5660_v55 = vld [vmem:[#allocation9 + $0x5e4] ss:$8 sps:$4 sm:$0xff]   ;;  %v5655_v56 = vld [vmem:[#allocation9 + $0x4e0] ss:$8 sps:$4 sm:$0xff]  }
  0xf6   :  { %2136 = vmatprep.subr.bf16.mxu1 %v5572_v57  ;;  %v5658_v57 = vld [vmem:[#allocation9 + $0x5e0] ss:$8 sps:$4 sm:$0xff]  }
  0xf8   :  { %2096 = vmatpush2.bf16.msra.mxu0 %v5567_v58  ;;  %v5663_v58 = vld [vmem:[#allocation9 + $0x4d4] ss:$8 sps:$4 sm:$0xff]  }
  0xf9   :  { %2137 = vmatpush2.bf16.msra.mxu1 %v5570_v59  ;;  %2097 = vmatprep.subr.bf16.mxu0 %v5575_v60  ;;  %v5666_v59 = vld [vmem:[#allocation9 + $0x5d4] ss:$8 sps:$4 sm:$0xff]   ;;  %v5661_v60 = vld [vmem:[#allocation9 + $0x4d0] ss:$8 sps:$4 sm:$0xff]  }
  0xfa   :  { %2138 = vmatprep.subr.bf16.mxu1 %v5578_v61  ;;  %v5664_v61 = vld [vmem:[#allocation9 + $0x5d0] ss:$8 sps:$4 sm:$0xff]  }
  0xfc   :  { %2098 = vmatpush2.bf16.msra.mxu0 %v5573_v62  ;;  %v5669_v62 = vld [vmem:[#allocation9 + $0x4c4] ss:$8 sps:$4 sm:$0xff]  }
  0xfd   :  { %2139 = vmatpush2.bf16.msra.mxu1 %v5576_v63  ;;  %2099 = vmatprep.subr.bf16.mxu0 %v5581_v0  ;;  %v5672_v63 = vld [vmem:[#allocation9 + $0x5c4] ss:$8 sps:$4 sm:$0xff]   ;;  %v5667_v0 = vld [vmem:[#allocation9 + $0x4c0] ss:$8 sps:$4 sm:$0xff]  }
  0xfe   :  { %2140 = vmatprep.subr.bf16.mxu1 %v5584_v1  ;;  %v5670_v1 = vld [vmem:[#allocation9 + $0x5c0] ss:$8 sps:$4 sm:$0xff]  }
 0x100   :  { %2100 = vmatpush2.bf16.msra.mxu0 %v5579_v2  ;;  %v5675_v2 = vld [vmem:[#allocation9 + $0x4b4] ss:$8 sps:$4 sm:$0xff]  }
 0x101   :  { %2141 = vmatpush2.bf16.msra.mxu1 %v5582_v3  ;;  %2101 = vmatprep.subr.bf16.mxu0 %v5587_v4  ;;  %v5678_v3 = vld [vmem:[#allocation9 + $0x5b4] ss:$8 sps:$4 sm:$0xff]   ;;  %v5673_v4 = vld [vmem:[#allocation9 + $0x4b0] ss:$8 sps:$4 sm:$0xff]  }
 0x102   :  { %2142 = vmatprep.subr.bf16.mxu1 %v5590_v5  ;;  %v5676_v5 = vld [vmem:[#allocation9 + $0x5b0] ss:$8 sps:$4 sm:$0xff]  }
 0x104   :  { %2102 = vmatpush2.bf16.msra.mxu0 %v5585_v6  ;;  %v5681_v6 = vld [vmem:[#allocation9 + $0x4a4] ss:$8 sps:$4 sm:$0xff]  }
 0x105   :  { %2143 = vmatpush2.bf16.msra.mxu1 %v5588_v7  ;;  %2103 = vmatprep.subr.bf16.mxu0 %v5593_v8  ;;  %v5684_v7 = vld [vmem:[#allocation9 + $0x5a4] ss:$8 sps:$4 sm:$0xff]   ;;  %v5679_v8 = vld [vmem:[#allocation9 + $0x4a0] ss:$8 sps:$4 sm:$0xff]  }
 0x106   :  { %2144 = vmatprep.subr.bf16.mxu1 %v5596_v9  ;;  %v5682_v9 = vld [vmem:[#allocation9 + $0x5a0] ss:$8 sps:$4 sm:$0xff]  }
 0x108   :  { %2104 = vmatpush2.bf16.msra.mxu0 %v5591_v10  ;;  %v5687_v10 = vld [vmem:[#allocation9 + $0x494] ss:$8 sps:$4 sm:$0xff]  }
 0x109   :  { %2145 = vmatpush2.bf16.msra.mxu1 %v5594_v11  ;;  %2155 = vmatprep.subr.bf16.mxu0 %v5603_v12  ;;  %v5690_v11 = vld [vmem:[#allocation9 + $0x594] ss:$8 sps:$4 sm:$0xff]   ;;  %v5685_v12 = vld [vmem:[#allocation9 + $0x490] ss:$8 sps:$4 sm:$0xff]  }
 0x10a   :  { %2196 = vmatprep.subr.bf16.mxu1 %v5606_v13  ;;  %v5688_v13 = vld [vmem:[#allocation9 + $0x590] ss:$8 sps:$4 sm:$0xff]  }
 0x10b   :  { %2106 = vmatmul.mubr.bf16.vlgmr.msra.gmra.mxu0 %v4714_v14  ;;  %v5693_v14 = vld [vmem:[#allocation9 + $0x484] ss:$8 sps:$4 sm:$0xff]  }
 0x10c   :  { %2147 = vmatmul.mubr.bf16.vlgmr.msra.gmra.mxu1 %v4716_v15  ;;  %2156 = vmatpush1.bf16.msra.mxu0 %v5601_v16  ;;  %v5696_v15 = vld [vmem:[#allocation9 + $0x584] ss:$8 sps:$4 sm:$0xff]   ;;  %v5691_v16 = vld [vmem:[#allocation9 + $0x480] ss:$8 sps:$4 sm:$0xff]  }
 0x10d   :  { %2197 = vmatpush1.bf16.msra.mxu1 %v5604_v17  ;;  %2157 = vmatprep.subr.bf16.mxu0 %v5609_v18  ;;  %v5694_v17 = vld [vmem:[#allocation9 + $0x580] ss:$8 sps:$4 sm:$0xff]   ;;  %v5703_v18 = vld [vmem:[#allocation9 + $0x674] ss:$8 sps:$4 sm:$0xff]  }
 0x10e   :  { %2198 = vmatprep.subr.bf16.mxu1 %v5612_v19  ;;  %2187 = vmatprep.mubr.bf16.mxu0 %v4719_v22  ;;  %v5706_v19 = vld [vmem:[#allocation9 + $0x774] ss:$8 sps:$4 sm:$0xff]   ;;  %v5701_v22 = vld [vmem:[#allocation9 + $0x670] ss:$8 sps:$4 sm:$0xff]  }
 0x10f   :  { %2228 = vmatprep.mubr.bf16.mxu1 %v4721_v23  ;;  %v5704_v23 = vld [vmem:[#allocation9 + $0x770] ss:$8 sps:$4 sm:$0xff]  }
 0x110   :  { %2158 = vmatpush1.bf16.msra.mxu0 %v5607_v24  ;;  %v4718_v24 = vcombine.low %v6706_v20, %v6706_v20  ;;  %v5707_v20 = vld [vmem:[#allocation9 + $0x660] ss:$8 sps:$4 sm:$0xff]  }
 0x111   :  { %2199 = vmatpush1.bf16.msra.mxu1 %v5610_v25  ;;  %2159 = vmatprep.subr.bf16.mxu0 %v5615_v26  ;;  %v4720_v25 = vcombine.low %v6708_v21, %v6708_v21  ;;  %v6718_v26 = vld [vmem:[#allocation4 + $0x30] sm:$0xff] }
 0x112   :  { %2200 = vmatprep.subr.bf16.mxu1 %v5618_v27  ;;  %v6720_v27 = vld [vmem:[#allocation4 + $0x38] sm:$0xff] }
 0x113   :  { %v5710_v21 = vld [vmem:[#allocation9 + $0x760] ss:$8 sps:$4 sm:$0xff]  }
 0x114   :  { %2160 = vmatpush1.bf16.msra.mxu0 %v5613_v28  ;;  %v5709_v28 = vld [vmem:[#allocation9 + $0x664] ss:$8 sps:$4 sm:$0xff]  }
 0x115   :  { %2201 = vmatpush1.bf16.msra.mxu1 %v5616_v29  ;;  %2161 = vmatprep.subr.bf16.mxu0 %v5621_v30  ;;  %v5712_v29 = vld [vmem:[#allocation9 + $0x764] ss:$8 sps:$4 sm:$0xff]   ;;  %v4723_v30 = vcombine.high %v6718_v26, %v6718_v26 }
 0x116   :  { %2202 = vmatprep.subr.bf16.mxu1 %v5624_v31  ;;  %v4725_v31 = vcombine.high %v6720_v27, %v6720_v27 }
 0x118   :  { %2162 = vmatpush1.bf16.msra.mxu0 %v5619_v32  ;;  %v5715_v32 = vld [vmem:[#allocation9 + $0x654] ss:$8 sps:$4 sm:$0xff]  }
 0x119   :  { %2203 = vmatpush1.bf16.msra.mxu1 %v5622_v33  ;;  %2163 = vmatprep.subr.bf16.mxu0 %v5627_v34  ;;  %v5718_v33 = vld [vmem:[#allocation9 + $0x754] ss:$8 sps:$4 sm:$0xff]   ;;  %v5713_v34 = vld [vmem:[#allocation9 + $0x650] ss:$8 sps:$4 sm:$0xff]  }
 0x11a   :  { %2204 = vmatprep.subr.bf16.mxu1 %v5630_v35  ;;  %v5716_v35 = vld [vmem:[#allocation9 + $0x750] ss:$8 sps:$4 sm:$0xff]  }
 0x11c   :  { %2164 = vmatpush1.bf16.msra.mxu0 %v5625_v36  ;;  %v5721_v36 = vld [vmem:[#allocation9 + $0x644] ss:$8 sps:$4 sm:$0xff]  }
 0x11d   :  { %2205 = vmatpush1.bf16.msra.mxu1 %v5628_v37  ;;  %2165 = vmatprep.subr.bf16.mxu0 %v5633_v38  ;;  %v5724_v37 = vld [vmem:[#allocation9 + $0x744] ss:$8 sps:$4 sm:$0xff]   ;;  %v5719_v38 = vld [vmem:[#allocation9 + $0x640] ss:$8 sps:$4 sm:$0xff]  }
 0x11e   :  { %2206 = vmatprep.subr.bf16.mxu1 %v5636_v39  ;;  %v5722_v39 = vld [vmem:[#allocation9 + $0x740] ss:$8 sps:$4 sm:$0xff]  }
 0x120   :  { %2166 = vmatpush1.bf16.msra.mxu0 %v5631_v40  ;;  %v5727_v40 = vld [vmem:[#allocation9 + $0x634] ss:$8 sps:$4 sm:$0xff]  }
 0x121   :  { %2207 = vmatpush1.bf16.msra.mxu1 %v5634_v41  ;;  %2167 = vmatprep.subr.bf16.mxu0 %v5639_v42  ;;  %v5730_v41 = vld [vmem:[#allocation9 + $0x734] ss:$8 sps:$4 sm:$0xff]   ;;  %v5725_v42 = vld [vmem:[#allocation9 + $0x630] ss:$8 sps:$4 sm:$0xff]  }
 0x122   :  { %2208 = vmatprep.subr.bf16.mxu1 %v5642_v43  ;;  %v5728_v43 = vld [vmem:[#allocation9 + $0x730] ss:$8 sps:$4 sm:$0xff]  }
 0x124   :  { %2168 = vmatpush1.bf16.msra.mxu0 %v5637_v44  ;;  %v5733_v44 = vld [vmem:[#allocation9 + $0x624] ss:$8 sps:$4 sm:$0xff]  }
 0x125   :  { %2209 = vmatpush1.bf16.msra.mxu1 %v5640_v45  ;;  %2169 = vmatprep.subr.bf16.mxu0 %v5645_v46  ;;  %v5736_v45 = vld [vmem:[#allocation9 + $0x724] ss:$8 sps:$4 sm:$0xff]   ;;  %v5731_v46 = vld [vmem:[#allocation9 + $0x620] ss:$8 sps:$4 sm:$0xff]  }
 0x126   :  { %2210 = vmatprep.subr.bf16.mxu1 %v5648_v47  ;;  %v5734_v47 = vld [vmem:[#allocation9 + $0x720] ss:$8 sps:$4 sm:$0xff]  }
 0x128   :  { %2170 = vmatpush1.bf16.msra.mxu0 %v5643_v48  ;;  %v5739_v48 = vld [vmem:[#allocation9 + $0x614] ss:$8 sps:$4 sm:$0xff]  }
 0x129   :  { %2211 = vmatpush1.bf16.msra.mxu1 %v5646_v49  ;;  %2171 = vmatprep.subr.bf16.mxu0 %v5651_v50  ;;  %v5742_v49 = vld [vmem:[#allocation9 + $0x714] ss:$8 sps:$4 sm:$0xff]   ;;  %v5737_v50 = vld [vmem:[#allocation9 + $0x610] ss:$8 sps:$4 sm:$0xff]  }
 0x12a   :  { %2212 = vmatprep.subr.bf16.mxu1 %v5654_v51  ;;  %v5740_v51 = vld [vmem:[#allocation9 + $0x710] ss:$8 sps:$4 sm:$0xff]  }
 0x12c   :  { %2172 = vmatpush2.bf16.msra.mxu0 %v5649_v52  ;;  %v5745_v52 = vld [vmem:[#allocation9 + $0x604] ss:$8 sps:$4 sm:$0xff]  }
 0x12d   :  { %2213 = vmatpush2.bf16.msra.mxu1 %v5652_v53  ;;  %2173 = vmatprep.subr.bf16.mxu0 %v5657_v54  ;;  %v5748_v53 = vld [vmem:[#allocation9 + $0x704] ss:$8 sps:$4 sm:$0xff]   ;;  %v5743_v54 = vld [vmem:[#allocation9 + $0x600] ss:$8 sps:$4 sm:$0xff]  }
 0x12e   :  { %2214 = vmatprep.subr.bf16.mxu1 %v5660_v55  ;;  %v5746_v55 = vld [vmem:[#allocation9 + $0x700] ss:$8 sps:$4 sm:$0xff]  }
 0x130   :  { %2174 = vmatpush2.bf16.msra.mxu0 %v5655_v56  ;;  %v5751_v56 = vld [vmem:[#allocation9 + $0x6f4] ss:$8 sps:$4 sm:$0xff]  }
 0x131   :  { %2215 = vmatpush2.bf16.msra.mxu1 %v5658_v57  ;;  %2175 = vmatprep.subr.bf16.mxu0 %v5663_v58  ;;  %v5754_v57 = vld [vmem:[#allocation9 + $0x7f4] ss:$8 sps:$4 sm:$0xff]   ;;  %v5749_v58 = vld [vmem:[#allocation9 + $0x6f0] ss:$8 sps:$4 sm:$0xff]  }
 0x132   :  { %2216 = vmatprep.subr.bf16.mxu1 %v5666_v59  ;;  %v5752_v59 = vld [vmem:[#allocation9 + $0x7f0] ss:$8 sps:$4 sm:$0xff]  }
 0x134   :  { %2176 = vmatpush2.bf16.msra.mxu0 %v5661_v60  ;;  %v5757_v60 = vld [vmem:[#allocation9 + $0x6e4] ss:$8 sps:$4 sm:$0xff]  }
 0x135   :  { %2217 = vmatpush2.bf16.msra.mxu1 %v5664_v61  ;;  %2177 = vmatprep.subr.bf16.mxu0 %v5669_v62  ;;  %v5760_v61 = vld [vmem:[#allocation9 + $0x7e4] ss:$8 sps:$4 sm:$0xff]   ;;  %v5755_v62 = vld [vmem:[#allocation9 + $0x6e0] ss:$8 sps:$4 sm:$0xff]  }
 0x136   :  { %2218 = vmatprep.subr.bf16.mxu1 %v5672_v63  ;;  %v5758_v63 = vld [vmem:[#allocation9 + $0x7e0] ss:$8 sps:$4 sm:$0xff]  }
 0x138   :  { %2178 = vmatpush2.bf16.msra.mxu0 %v5667_v0  ;;  %v5763_v0 = vld [vmem:[#allocation9 + $0x6d4] ss:$8 sps:$4 sm:$0xff]  }
 0x139   :  { %2219 = vmatpush2.bf16.msra.mxu1 %v5670_v1  ;;  %2179 = vmatprep.subr.bf16.mxu0 %v5675_v2  ;;  %v5766_v1 = vld [vmem:[#allocation9 + $0x7d4] ss:$8 sps:$4 sm:$0xff]   ;;  %v5761_v2 = vld [vmem:[#allocation9 + $0x6d0] ss:$8 sps:$4 sm:$0xff]  }
 0x13a   :  { %2220 = vmatprep.subr.bf16.mxu1 %v5678_v3  ;;  %v5764_v3 = vld [vmem:[#allocation9 + $0x7d0] ss:$8 sps:$4 sm:$0xff]  }
 0x13c   :  { %2180 = vmatpush2.bf16.msra.mxu0 %v5673_v4  ;;  %v5769_v4 = vld [vmem:[#allocation9 + $0x6c4] ss:$8 sps:$4 sm:$0xff]  }
 0x13d   :  { %2221 = vmatpush2.bf16.msra.mxu1 %v5676_v5  ;;  %2181 = vmatprep.subr.bf16.mxu0 %v5681_v6  ;;  %v5772_v5 = vld [vmem:[#allocation9 + $0x7c4] ss:$8 sps:$4 sm:$0xff]   ;;  %v5767_v6 = vld [vmem:[#allocation9 + $0x6c0] ss:$8 sps:$4 sm:$0xff]  }
 0x13e   :  { %2222 = vmatprep.subr.bf16.mxu1 %v5684_v7  ;;  %v5770_v7 = vld [vmem:[#allocation9 + $0x7c0] ss:$8 sps:$4 sm:$0xff]  }
 0x140   :  { %2182 = vmatpush2.bf16.msra.mxu0 %v5679_v8  ;;  %v5775_v8 = vld [vmem:[#allocation9 + $0x6b4] ss:$8 sps:$4 sm:$0xff]  }
 0x141   :  { %2223 = vmatpush2.bf16.msra.mxu1 %v5682_v9  ;;  %2183 = vmatprep.subr.bf16.mxu0 %v5687_v10  ;;  %v5778_v9 = vld [vmem:[#allocation9 + $0x7b4] ss:$8 sps:$4 sm:$0xff]   ;;  %v5773_v10 = vld [vmem:[#allocation9 + $0x6b0] ss:$8 sps:$4 sm:$0xff]  }
 0x142   :  { %2224 = vmatprep.subr.bf16.mxu1 %v5690_v11  ;;  %v5776_v11 = vld [vmem:[#allocation9 + $0x7b0] ss:$8 sps:$4 sm:$0xff]  }
 0x144   :  { %2184 = vmatpush2.bf16.msra.mxu0 %v5685_v12  ;;  %v5781_v12 = vld [vmem:[#allocation9 + $0x6a4] ss:$8 sps:$4 sm:$0xff]  }
 0x145   :  { %2225 = vmatpush2.bf16.msra.mxu1 %v5688_v13  ;;  %2185 = vmatprep.subr.bf16.mxu0 %v5693_v14  ;;  %v5784_v13 = vld [vmem:[#allocation9 + $0x7a4] ss:$8 sps:$4 sm:$0xff]   ;;  %v5779_v14 = vld [vmem:[#allocation9 + $0x6a0] ss:$8 sps:$4 sm:$0xff]  }
 0x146   :  { %2226 = vmatprep.subr.bf16.mxu1 %v5696_v15  ;;  %v5782_v15 = vld [vmem:[#allocation9 + $0x7a0] ss:$8 sps:$4 sm:$0xff]  }
 0x148   :  { %2186 = vmatpush2.bf16.msra.mxu0 %v5691_v16  ;;  %v5787_v16 = vld [vmem:[#allocation9 + $0x694] ss:$8 sps:$4 sm:$0xff]  }
 0x149   :  { %2227 = vmatpush2.bf16.msra.mxu1 %v5694_v17  ;;  %2237 = vmatprep.subr.bf16.mxu0 %v5703_v18  ;;  %v5790_v17 = vld [vmem:[#allocation9 + $0x794] ss:$8 sps:$4 sm:$0xff]   ;;  %v5785_v18 = vld [vmem:[#allocation9 + $0x690] ss:$8 sps:$4 sm:$0xff]  }
 0x14a   :  { %2278 = vmatprep.subr.bf16.mxu1 %v5706_v19  ;;  %v5788_v19 = vld [vmem:[#allocation9 + $0x790] ss:$8 sps:$4 sm:$0xff]  }
 0x14b   :  { %2188 = vmatmul.mubr.bf16.vlgmr.msra.gmra.mxu0 %v4718_v24  ;;  %v5791_v24 = vld [vmem:[#allocation9 + $0x680] ss:$8 sps:$4 sm:$0xff]  }
 0x14c   :  { %2229 = vmatmul.mubr.bf16.vlgmr.msra.gmra.mxu1 %v4720_v25  ;;  %2238 = vmatpush1.bf16.msra.mxu0 %v5701_v22  ;;  %v5793_v22 = vld [vmem:[#allocation9 + $0x684] ss:$8 sps:$4 sm:$0xff]   ;;  %v5794_v25 = vld [vmem:[#allocation9 + $0x780] ss:$8 sps:$4 sm:$0xff]  }
 0x14d   :  { %2279 = vmatpush1.bf16.msra.mxu1 %v5704_v23  ;;  %2239 = vmatprep.subr.bf16.mxu0 %v5709_v28  ;;  %v5796_v23 = vld [vmem:[#allocation9 + $0x784] ss:$8 sps:$4 sm:$0xff]   ;;  %v5803_v28 = vld [vmem:[#allocation9 + $0x874] ss:$8 sps:$4 sm:$0xff]  }
 0x14e   :  { %2280 = vmatprep.subr.bf16.mxu1 %v5712_v29  ;;  %2269 = vmatprep.mubr.bf16.mxu0 %v4723_v30  ;;  %v5806_v29 = vld [vmem:[#allocation10 + $0x74] ss:$8 sps:$4 sm:$0xff]  }
 0x14f   :  { %2310 = vmatprep.mubr.bf16.mxu1 %v4725_v31  ;;  %v6726_v30 = vld [vmem:[#allocation4 + $0x40] sm:$0xff]  ;;  %v4722_v31 = vcombine.low %v6718_v26, %v6718_v26 }
 0x150   :  { %2240 = vmatpush1.bf16.msra.mxu0 %v5707_v20  ;;  %v4724_v20 = vcombine.low %v6720_v27, %v6720_v27  ;;  %v5807_v27 = vld [vmem:[#allocation9 + $0x860] ss:$8 sps:$4 sm:$0xff]  }
 0x151   :  { %2281 = vmatpush1.bf16.msra.mxu1 %v5710_v21  ;;  %2241 = vmatprep.subr.bf16.mxu0 %v5715_v32  ;;  %v6732_v21 = vld [vmem:[#allocation7] sm:$0xff] }
 0x152   :  { %2282 = vmatprep.subr.bf16.mxu1 %v5718_v33  ;;  %v5801_v32 = vld [vmem:[#allocation9 + $0x870] ss:$8 sps:$4 sm:$0xff]  }
 0x153   :  { %v5804_v33 = vld [vmem:[#allocation10 + $0x70] ss:$8 sps:$4 sm:$0xff]  }
 0x154   :  { %2242 = vmatpush1.bf16.msra.mxu0 %v5713_v34  ;;  %v5809_v34 = vld [vmem:[#allocation9 + $0x864] ss:$8 sps:$4 sm:$0xff]  }
 0x155   :  { %2283 = vmatpush1.bf16.msra.mxu1 %v5716_v35  ;;  %2243 = vmatprep.subr.bf16.mxu0 %v5721_v36  ;;  %v5812_v35 = vld [vmem:[#allocation10 + $0x64] ss:$8 sps:$4 sm:$0xff]   ;;  %v4727_v36 = vcombine.high %v6726_v30, %v6726_v30 }
 0x156   :  { %2284 = vmatprep.subr.bf16.mxu1 %v5724_v37  ;;  %v5017_v37 = vcombine.high %v6732_v21, %v6732_v21 }
 0x158   :  { %2244 = vmatpush1.bf16.msra.mxu0 %v5719_v38 }
 0x159   :  { %2285 = vmatpush1.bf16.msra.mxu1 %v5722_v39  ;;  %2245 = vmatprep.subr.bf16.mxu0 %v5727_v40  ;;  %v5810_v39 = vld [vmem:[#allocation10 + $0x60] ss:$8 sps:$4 sm:$0xff]  }
 0x15a   :  { %2286 = vmatprep.subr.bf16.mxu1 %v5730_v41  ;;  %v5815_v41 = vld [vmem:[#allocation9 + $0x854] ss:$8 sps:$4 sm:$0xff]  }
 0x15c   :  { %2246 = vmatpush1.bf16.msra.mxu0 %v5725_v42 }
 0x15d   :  { %2287 = vmatpush1.bf16.msra.mxu1 %v5728_v43  ;;  %2247 = vmatprep.subr.bf16.mxu0 %v5733_v44  ;;  %v5818_v44 = vld [vmem:[#allocation10 + $0x54] ss:$8 sps:$4 sm:$0xff]  }
 0x15e   :  { %2288 = vmatprep.subr.bf16.mxu1 %v5736_v45 }
 0x160   :  { %2248 = vmatpush1.bf16.msra.mxu0 %v5731_v46 }
 0x161   :  { %2289 = vmatpush1.bf16.msra.mxu1 %v5734_v47  ;;  %2249 = vmatprep.subr.bf16.mxu0 %v5739_v48  ;;  %v5813_v48 = vld [vmem:[#allocation9 + $0x850] ss:$8 sps:$4 sm:$0xff]  }
 0x162   :  { %2290 = vmatprep.subr.bf16.mxu1 %v5742_v49  ;;  %v5816_v49 = vld [vmem:[#allocation10 + $0x50] ss:$8 sps:$4 sm:$0xff]  }
 0x164   :  { %2250 = vmatpush1.bf16.msra.mxu0 %v5737_v50  ;;  %v5821_v50 = vld [vmem:[#allocation9 + $0x844] ss:$8 sps:$4 sm:$0xff]  }
 0x165   :  { %2291 = vmatpush1.bf16.msra.mxu1 %v5740_v51  ;;  %2251 = vmatprep.subr.bf16.mxu0 %v5745_v52 }
 0x166   :  { %2292 = vmatprep.subr.bf16.mxu1 %v5748_v53  ;;  %v5824_v53 = vld [vmem:[#allocation10 + $0x44] ss:$8 sps:$4 sm:$0xff]  }
 0x168   :  { %2252 = vmatpush1.bf16.msra.mxu0 %v5743_v54  ;;  %v5819_v54 = vld [vmem:[#allocation9 + $0x840] ss:$8 sps:$4 sm:$0xff]  }
 0x169   :  { %2293 = vmatpush1.bf16.msra.mxu1 %v5746_v55  ;;  %2253 = vmatprep.subr.bf16.mxu0 %v5751_v56  ;;  %v5822_v55 = vld [vmem:[#allocation10 + $0x40] ss:$8 sps:$4 sm:$0xff]   ;;  %v5827_v56 = vld [vmem:[#allocation9 + $0x834] ss:$8 sps:$4 sm:$0xff]  }
 0x16a   :  { %2294 = vmatprep.subr.bf16.mxu1 %v5754_v57  ;;  %v5830_v57 = vld [vmem:[#allocation10 + $0x34] ss:$8 sps:$4 sm:$0xff]  }
 0x16c   :  { %2254 = vmatpush2.bf16.msra.mxu0 %v5749_v58  ;;  %v5825_v58 = vld [vmem:[#allocation9 + $0x830] ss:$8 sps:$4 sm:$0xff]  }
 0x16d   :  { %2295 = vmatpush2.bf16.msra.mxu1 %v5752_v59  ;;  %2255 = vmatprep.subr.bf16.mxu0 %v5757_v60  ;;  %v5828_v59 = vld [vmem:[#allocation10 + $0x30] ss:$8 sps:$4 sm:$0xff]   ;;  %v5833_v60 = vld [vmem:[#allocation9 + $0x824] ss:$8 sps:$4 sm:$0xff]  }
 0x16e   :  { %2296 = vmatprep.subr.bf16.mxu1 %v5760_v61  ;;  %v5836_v61 = vld [vmem:[#allocation10 + $0x24] ss:$8 sps:$4 sm:$0xff]  }
 0x170   :  { %2256 = vmatpush2.bf16.msra.mxu0 %v5755_v62  ;;  %v5831_v62 = vld [vmem:[#allocation9 + $0x820] ss:$8 sps:$4 sm:$0xff]  }
 0x171   :  { %2297 = vmatpush2.bf16.msra.mxu1 %v5758_v63  ;;  %2257 = vmatprep.subr.bf16.mxu0 %v5763_v0  ;;  %v5834_v63 = vld [vmem:[#allocation10 + $0x20] ss:$8 sps:$4 sm:$0xff]   ;;  %v5839_v0 = vld [vmem:[#allocation9 + $0x814] ss:$8 sps:$4 sm:$0xff]  }
 0x172   :  { %2298 = vmatprep.subr.bf16.mxu1 %v5766_v1  ;;  %v5842_v1 = vld [vmem:[#allocation10 + $0x14] ss:$8 sps:$4 sm:$0xff]  }
 0x174   :  { %2258 = vmatpush2.bf16.msra.mxu0 %v5761_v2  ;;  %v5837_v2 = vld [vmem:[#allocation9 + $0x810] ss:$8 sps:$4 sm:$0xff]  }
 0x175   :  { %2299 = vmatpush2.bf16.msra.mxu1 %v5764_v3  ;;  %2259 = vmatprep.subr.bf16.mxu0 %v5769_v4  ;;  %v5840_v3 = vld [vmem:[#allocation10 + $0x10] ss:$8 sps:$4 sm:$0xff]   ;;  %v5845_v4 = vld [vmem:[#allocation9 + $0x804] ss:$8 sps:$4 sm:$0xff]  }
 0x176   :  { %2300 = vmatprep.subr.bf16.mxu1 %v5772_v5  ;;  %v5848_v5 = vld [vmem:[#allocation10 + $0x4] ss:$8 sps:$4 sm:$0xff]  }
 0x178   :  { %2260 = vmatpush2.bf16.msra.mxu0 %v5767_v6  ;;  %v5843_v6 = vld [vmem:[#allocation9 + $0x800] ss:$8 sps:$4 sm:$0xff]  }
 0x179   :  { %2301 = vmatpush2.bf16.msra.mxu1 %v5770_v7  ;;  %2261 = vmatprep.subr.bf16.mxu0 %v5775_v8  ;;  %v5846_v7 = vld [vmem:[#allocation10] ss:$8 sps:$4 sm:$0xff]   ;;  %v5851_v8 = vld [vmem:[#allocation9 + $0x8f4] ss:$8 sps:$4 sm:$0xff]  }
 0x17a   :  { %2302 = vmatprep.subr.bf16.mxu1 %v5778_v9  ;;  %v5854_v9 = vld [vmem:[#allocation10 + $0xf4] ss:$8 sps:$4 sm:$0xff]  }
 0x17c   :  { %2262 = vmatpush2.bf16.msra.mxu0 %v5773_v10  ;;  %v5849_v10 = vld [vmem:[#allocation9 + $0x8f0] ss:$8 sps:$4 sm:$0xff]  }
 0x17d   :  { %2303 = vmatpush2.bf16.msra.mxu1 %v5776_v11  ;;  %2263 = vmatprep.subr.bf16.mxu0 %v5781_v12  ;;  %v5852_v11 = vld [vmem:[#allocation10 + $0xf0] ss:$8 sps:$4 sm:$0xff]   ;;  %v5857_v12 = vld [vmem:[#allocation9 + $0x8e4] ss:$8 sps:$4 sm:$0xff]  }
 0x17e   :  { %2304 = vmatprep.subr.bf16.mxu1 %v5784_v13  ;;  %v5860_v13 = vld [vmem:[#allocation10 + $0xe4] ss:$8 sps:$4 sm:$0xff]  }
 0x180   :  { %2264 = vmatpush2.bf16.msra.mxu0 %v5779_v14  ;;  %v5855_v14 = vld [vmem:[#allocation9 + $0x8e0] ss:$8 sps:$4 sm:$0xff]  }
 0x181   :  { %2305 = vmatpush2.bf16.msra.mxu1 %v5782_v15  ;;  %2265 = vmatprep.subr.bf16.mxu0 %v5787_v16  ;;  %v5858_v15 = vld [vmem:[#allocation10 + $0xe0] ss:$8 sps:$4 sm:$0xff]   ;;  %v5863_v16 = vld [vmem:[#allocation9 + $0x8d4] ss:$8 sps:$4 sm:$0xff]  }
 0x182   :  { %2306 = vmatprep.subr.bf16.mxu1 %v5790_v17  ;;  %v5866_v17 = vld [vmem:[#allocation10 + $0xd4] ss:$8 sps:$4 sm:$0xff]  }
 0x184   :  { %2266 = vmatpush2.bf16.msra.mxu0 %v5785_v18  ;;  %v5861_v18 = vld [vmem:[#allocation9 + $0x8d0] ss:$8 sps:$4 sm:$0xff]  }
 0x185   :  { %2307 = vmatpush2.bf16.msra.mxu1 %v5788_v19  ;;  %2267 = vmatprep.subr.bf16.mxu0 %v5793_v22  ;;  %v5864_v19 = vld [vmem:[#allocation10 + $0xd0] ss:$8 sps:$4 sm:$0xff]   ;;  %v5869_v22 = vld [vmem:[#allocation9 + $0x8c4] ss:$8 sps:$4 sm:$0xff]  }
 0x186   :  { %2308 = vmatprep.subr.bf16.mxu1 %v5796_v23  ;;  %v5872_v23 = vld [vmem:[#allocation10 + $0xc4] ss:$8 sps:$4 sm:$0xff]  }
 0x188   :  { %2268 = vmatpush2.bf16.msra.mxu0 %v5791_v24  ;;  %v5867_v24 = vld [vmem:[#allocation9 + $0x8c0] ss:$8 sps:$4 sm:$0xff]  }
 0x189   :  { %2309 = vmatpush2.bf16.msra.mxu1 %v5794_v25  ;;  %2319 = vmatprep.subr.bf16.mxu0 %v5803_v28  ;;  %v5870_v25 = vld [vmem:[#allocation10 + $0xc0] ss:$8 sps:$4 sm:$0xff]   ;;  %v5875_v28 = vld [vmem:[#allocation9 + $0x8b4] ss:$8 sps:$4 sm:$0xff]  }
 0x18a   :  { %4151 = vmatprep.subr.bf16.mxu1 %v5806_v29  ;;  %v5878_v29 = vld [vmem:[#allocation10 + $0xb4] ss:$8 sps:$4 sm:$0xff]  }
 0x18b   :  { %v2025_v26 = vpop.f32.mrf.mxu0  ;;  %2270 = vmatmul.mubr.bf16.vlgmr.msra.gmra.mxu0 %v4722_v31  ;;  %v5873_v31 = vld [vmem:[#allocation9 + $0x8b0] ss:$8 sps:$4 sm:$0xff]  }
 0x18c   :  { %v2066_v38 = vpop.f32.mrf.mxu1  ;;  %2311 = vmatmul.mubr.bf16.vlgmr.msra.gmra.mxu1 %v4724_v20  ;;  %2320 = vmatpush1.bf16.msra.mxu0 %v5801_v32  ;;  %v5876_v20 = vld [vmem:[#allocation10 + $0xb0] ss:$8 sps:$4 sm:$0xff]   ;;  %v5881_v32 = vld [vmem:[#allocation9 + $0x8a4] ss:$8 sps:$4 sm:$0xff]  }
 0x18d   :  { %v6738_v40 = vadd.f32 %v2066_v38, %v2025_v26  ;;  %4152 = vmatpush1.bf16.msra.mxu1 %v5804_v33  ;;  %v2027_v42 = vpop.f32.mrf.mxu0  ;;  %2321 = vmatprep.subr.bf16.mxu0 %v5809_v34  ;;  %v5884_v33 = vld [vmem:[#allocation10 + $0xa4] ss:$8 sps:$4 sm:$0xff]   ;;  %v5879_v34 = vld [vmem:[#allocation9 + $0x8a0] ss:$8 sps:$4 sm:$0xff]   ;;  %v5885_v26 = vld [vmem:[#allocation9 + $0x890] ss:$8 sps:$4 sm:$0xff]  }
 0x18e   :  { %v2068_v43 = vpop.f32.mrf.mxu1  ;;  %4153 = vmatprep.subr.bf16.mxu1 %v5812_v35  ;;  %2351 = vmatprep.mubr.bf16.mxu0 %v4727_v36  ;;  %v5882_v35 = vld [vmem:[#allocation10 + $0xa0] ss:$8 sps:$4 sm:$0xff]   ;;  %v5887_v36 = vld [vmem:[#allocation9 + $0x894] ss:$8 sps:$4 sm:$0xff]   ;;  %v5888_v38 = vld [vmem:[#allocation10 + $0x90] ss:$8 sps:$4 sm:$0xff]  }
 0x18f   :  { %v6740_v45 = vadd.f32 %v2068_v43, %v2027_v42  ;;  %4183 = vmatprep.mubr.bf16.mxu1 %v5017_v37  ;;  %v2029_v46 = vpop.f32.mrf.mxu0  ;;  %v5890_v37 = vld [vmem:[#allocation10 + $0x94] ss:$8 sps:$4 sm:$0xff]   ;;  %v5894_v42 = vld [vmem:[#allocation10 + $0x80] ss:$8 sps:$4 sm:$0xff]  }
 0x190   :  { %v2070_v47 = vpop.f32.mrf.mxu1  ;;  %2322 = vmatpush1.bf16.msra.mxu0 %v5807_v27  ;;  %v5893_v27 = vld [vmem:[#allocation9 + $0x884] ss:$8 sps:$4 sm:$0xff]   ;;  %v5903_v43 = vld [vmem:[#allocation10 + $0x174] ss:$8 sps:$4 sm:$0xff]   ;;  %v5901_v46 = vld [vmem:[#allocation10 + $0x170] ss:$8 sps:$4 sm:$0xff]  }
 0x191   :  { %4154 = vmatpush1.bf16.msra.mxu1 %v5810_v39  ;;  %v2030_v51 = vpop.f32.mrf.mxu0  ;;  %2323 = vmatprep.subr.bf16.mxu0 %v5815_v41  ;;  %v5896_v39 = vld [vmem:[#allocation10 + $0x84] ss:$8 sps:$4 sm:$0xff]   ;;  %v5891_v41 = vld [vmem:[#allocation9 + $0x880] ss:$8 sps:$4 sm:$0xff]   ;;  %v5904_v47 = vld [vmem:[#allocation10 + $0x270] ss:$8 sps:$4 sm:$0xff]  }
 0x192   :  { %v2071_v52 = vpop.f32.mrf.mxu1  ;;  %4155 = vmatprep.subr.bf16.mxu1 %v5818_v44  ;;  %v5906_v44 = vld [vmem:[#allocation10 + $0x274] ss:$8 sps:$4 sm:$0xff]   ;;  %v6748_v51 = vld [vmem:[#allocation7 + $0x10] sm:$0xff] }
 0x193   :  { %v5909_v52 = vld [vmem:[#allocation10 + $0x164] ss:$8 sps:$4 sm:$0xff]  }
 0x194   :  { %2324 = vmatpush1.bf16.msra.mxu0 %v5813_v48  ;;  %v4726_v48 = vcombine.low %v6726_v30, %v6726_v30  ;;  %v5021_v30 = vcombine.high %v6748_v51, %v6748_v51 }
 0x195   :  { %4156 = vmatpush1.bf16.msra.mxu1 %v5816_v49  ;;  %2325 = vmatprep.subr.bf16.mxu0 %v5821_v50  ;;  %v5016_v49 = vcombine.low %v6732_v21, %v6732_v21  ;;  %v6746_v50 = vld [vmem:[#allocation7 + $0x8] sm:$0xff] }
 0x196   :  { %4157 = vmatprep.subr.bf16.mxu1 %v5824_v53  ;;  %v5912_v53 = vld [vmem:[#allocation10 + $0x264] ss:$8 sps:$4 sm:$0xff]  }
 0x198   :  { %2326 = vmatpush1.bf16.msra.mxu0 %v5819_v54  ;;  %v5907_v54 = vld [vmem:[#allocation10 + $0x160] ss:$8 sps:$4 sm:$0xff]  }
 0x199   :  { %4158 = vmatpush1.bf16.msra.mxu1 %v5822_v55  ;;  %2327 = vmatprep.subr.bf16.mxu0 %v5827_v56  ;;  %v5910_v55 = vld [vmem:[#allocation10 + $0x260] ss:$8 sps:$4 sm:$0xff]   ;;  %v5019_v56 = vcombine.high %v6746_v50, %v6746_v50 }
 0x19a   :  { %4159 = vmatprep.subr.bf16.mxu1 %v5830_v57 }
 0x19c   :  { %2328 = vmatpush1.bf16.msra.mxu0 %v5825_v58 }
 0x19d   :  { %4160 = vmatpush1.bf16.msra.mxu1 %v5828_v59  ;;  %2329 = vmatprep.subr.bf16.mxu0 %v5833_v60 }
 0x19e   :  { %4161 = vmatprep.subr.bf16.mxu1 %v5836_v61  ;;  %v5915_v61 = vld [vmem:[#allocation10 + $0x154] ss:$8 sps:$4 sm:$0xff]  }
 0x1a0   :  { %2330 = vmatpush1.bf16.msra.mxu0 %v5831_v62  ;;  %v5918_v62 = vld [vmem:[#allocation10 + $0x254] ss:$8 sps:$4 sm:$0xff]  }
 0x1a1   :  { %4162 = vmatpush1.bf16.msra.mxu1 %v5834_v63  ;;  %2331 = vmatprep.subr.bf16.mxu0 %v5839_v0 }
 0x1a2   :  { %4163 = vmatprep.subr.bf16.mxu1 %v5842_v1  ;;  %v5913_v1 = vld [vmem:[#allocation10 + $0x150] ss:$8 sps:$4 sm:$0xff]  }
 0x1a4   :  { %2332 = vmatpush1.bf16.msra.mxu0 %v5837_v2  ;;  %v5916_v2 = vld [vmem:[#allocation10 + $0x250] ss:$8 sps:$4 sm:$0xff]  }
 0x1a5   :  { %4164 = vmatpush1.bf16.msra.mxu1 %v5840_v3  ;;  %2333 = vmatprep.subr.bf16.mxu0 %v5845_v4 }
 0x1a6   :  { %4165 = vmatprep.subr.bf16.mxu1 %v5848_v5 }
 0x1a8   :  { %2334 = vmatpush1.bf16.msra.mxu0 %v5843_v6 }
 0x1a9   :  { %4166 = vmatpush1.bf16.msra.mxu1 %v5846_v7  ;;  %2335 = vmatprep.subr.bf16.mxu0 %v5851_v8  ;;  %v5921_v7 = vld [vmem:[#allocation10 + $0x144] ss:$8 sps:$4 sm:$0xff]  }
 0x1aa   :  { %4167 = vmatprep.subr.bf16.mxu1 %v5854_v9  ;;  %v5924_v8 = vld [vmem:[#allocation10 + $0x244] ss:$8 sps:$4 sm:$0xff]   ;;  %v5919_v9 = vld [vmem:[#allocation10 + $0x140] ss:$8 sps:$4 sm:$0xff]  }
 0x1ac   :  { %2336 = vmatpush2.bf16.msra.mxu0 %v5849_v10  ;;  %v5927_v10 = vld [vmem:[#allocation10 + $0x134] ss:$8 sps:$4 sm:$0xff]  }
 0x1ad   :  { %4168 = vmatpush2.bf16.msra.mxu1 %v5852_v11  ;;  %2337 = vmatprep.subr.bf16.mxu0 %v5857_v12  ;;  %v5930_v11 = vld [vmem:[#allocation10 + $0x234] ss:$8 sps:$4 sm:$0xff]   ;;  %v5925_v12 = vld [vmem:[#allocation10 + $0x130] ss:$8 sps:$4 sm:$0xff]  }
 0x1ae   :  { %4169 = vmatprep.subr.bf16.mxu1 %v5860_v13  ;;  %v5928_v13 = vld [vmem:[#allocation10 + $0x230] ss:$8 sps:$4 sm:$0xff]  }
 0x1b0   :  { %2338 = vmatpush2.bf16.msra.mxu0 %v5855_v14  ;;  %v5933_v14 = vld [vmem:[#allocation10 + $0x124] ss:$8 sps:$4 sm:$0xff]  }
 0x1b1   :  { %4170 = vmatpush2.bf16.msra.mxu1 %v5858_v15  ;;  %2339 = vmatprep.subr.bf16.mxu0 %v5863_v16  ;;  %v5936_v15 = vld [vmem:[#allocation10 + $0x224] ss:$8 sps:$4 sm:$0xff]   ;;  %v5931_v16 = vld [vmem:[#allocation10 + $0x120] ss:$8 sps:$4 sm:$0xff]  }
 0x1b2   :  { %4171 = vmatprep.subr.bf16.mxu1 %v5866_v17  ;;  %v5934_v17 = vld [vmem:[#allocation10 + $0x220] ss:$8 sps:$4 sm:$0xff]  }
 0x1b4   :  { %2340 = vmatpush2.bf16.msra.mxu0 %v5861_v18  ;;  %v5939_v18 = vld [vmem:[#allocation10 + $0x114] ss:$8 sps:$4 sm:$0xff]  }
 0x1b5   :  { %4172 = vmatpush2.bf16.msra.mxu1 %v5864_v19  ;;  %2341 = vmatprep.subr.bf16.mxu0 %v5869_v22  ;;  %v5942_v19 = vld [vmem:[#allocation10 + $0x214] ss:$8 sps:$4 sm:$0xff]   ;;  %v5937_v22 = vld [vmem:[#allocation10 + $0x110] ss:$8 sps:$4 sm:$0xff]  }
 0x1b6   :  { %4173 = vmatprep.subr.bf16.mxu1 %v5872_v23  ;;  %v5940_v23 = vld [vmem:[#allocation10 + $0x210] ss:$8 sps:$4 sm:$0xff]  }
 0x1b8   :  { %2342 = vmatpush2.bf16.msra.mxu0 %v5867_v24  ;;  %v5945_v24 = vld [vmem:[#allocation10 + $0x104] ss:$8 sps:$4 sm:$0xff]  }
 0x1b9   :  { %4174 = vmatpush2.bf16.msra.mxu1 %v5870_v25  ;;  %2343 = vmatprep.subr.bf16.mxu0 %v5875_v28  ;;  %v5948_v25 = vld [vmem:[#allocation10 + $0x204] ss:$8 sps:$4 sm:$0xff]   ;;  %v5943_v28 = vld [vmem:[#allocation10 + $0x100] ss:$8 sps:$4 sm:$0xff]  }
 0x1ba   :  { %4175 = vmatprep.subr.bf16.mxu1 %v5878_v29  ;;  %v5946_v29 = vld [vmem:[#allocation10 + $0x200] ss:$8 sps:$4 sm:$0xff]  }
 0x1bc   :  { %2344 = vmatpush2.bf16.msra.mxu0 %v5873_v31  ;;  %v5951_v31 = vld [vmem:[#allocation10 + $0x1f4] ss:$8 sps:$4 sm:$0xff]  }
 0x1bd   :  { %4176 = vmatpush2.bf16.msra.mxu1 %v5876_v20  ;;  %2345 = vmatprep.subr.bf16.mxu0 %v5881_v32  ;;  %v5954_v20 = vld [vmem:[#allocation10 + $0x2f4] ss:$8 sps:$4 sm:$0xff]   ;;  %v5949_v32 = vld [vmem:[#allocation10 + $0x1f0] ss:$8 sps:$4 sm:$0xff]  }
 0x1be   :  { %4177 = vmatprep.subr.bf16.mxu1 %v5884_v33  ;;  %v5952_v33 = vld [vmem:[#allocation10 + $0x2f0] ss:$8 sps:$4 sm:$0xff]  }
 0x1c0   :  { %2346 = vmatpush2.bf16.msra.mxu0 %v5879_v34  ;;  %v5957_v34 = vld [vmem:[#allocation10 + $0x1e4] ss:$8 sps:$4 sm:$0xff]  }
 0x1c1   :  { %4178 = vmatpush2.bf16.msra.mxu1 %v5882_v35  ;;  %2347 = vmatprep.subr.bf16.mxu0 %v5887_v36  ;;  %v5960_v35 = vld [vmem:[#allocation10 + $0x2e4] ss:$8 sps:$4 sm:$0xff]   ;;  %v5955_v36 = vld [vmem:[#allocation10 + $0x1e0] ss:$8 sps:$4 sm:$0xff]  }
 0x1c2   :  { %4179 = vmatprep.subr.bf16.mxu1 %v5890_v37  ;;  %v5958_v37 = vld [vmem:[#allocation10 + $0x2e0] ss:$8 sps:$4 sm:$0xff]  }
 0x1c4   :  { %2348 = vmatpush2.bf16.msra.mxu0 %v5885_v26  ;;  %v5963_v26 = vld [vmem:[#allocation10 + $0x1d4] ss:$8 sps:$4 sm:$0xff]  }
 0x1c5   :  { %4180 = vmatpush2.bf16.msra.mxu1 %v5888_v38  ;;  %2349 = vmatprep.subr.bf16.mxu0 %v5893_v27  ;;  %v5966_v38 = vld [vmem:[#allocation10 + $0x2d4] ss:$8 sps:$4 sm:$0xff]   ;;  %v5961_v27 = vld [vmem:[#allocation10 + $0x1d0] ss:$8 sps:$4 sm:$0xff]  }
 0x1c6   :  { %4181 = vmatprep.subr.bf16.mxu1 %v5896_v39  ;;  %v5964_v39 = vld [vmem:[#allocation10 + $0x2d0] ss:$8 sps:$4 sm:$0xff]  }
 0x1c8   :  { %2350 = vmatpush2.bf16.msra.mxu0 %v5891_v41  ;;  %v5969_v41 = vld [vmem:[#allocation10 + $0x1c4] ss:$8 sps:$4 sm:$0xff]  }
 0x1c9   :  { %4182 = vmatpush2.bf16.msra.mxu1 %v5894_v42  ;;  %4192 = vmatprep.subr.bf16.mxu0 %v5903_v43  ;;  %v5972_v42 = vld [vmem:[#allocation10 + $0x2c4] ss:$8 sps:$4 sm:$0xff]   ;;  %v5967_v43 = vld [vmem:[#allocation10 + $0x1c0] ss:$8 sps:$4 sm:$0xff]  }
 0x1ca   :  { %4233 = vmatprep.subr.bf16.mxu1 %v5906_v44  ;;  %v5970_v44 = vld [vmem:[#allocation10 + $0x2c0] ss:$8 sps:$4 sm:$0xff]  }
 0x1cb   :  { %v2107_v57 = vpop.f32.mrf.mxu0  ;;  %2352 = vmatmul.mubr.bf16.vlgmr.msra.gmra.mxu0 %v4726_v48  ;;  %v5973_v48 = vld [vmem:[#allocation10 + $0x1b0] ss:$8 sps:$4 sm:$0xff]  }
 0x1cc   :  { %v2148_v21 = vpop.f32.mrf.mxu1  ;;  %4184 = vmatmul.mubr.bf16.vlgmr.msra.gmra.mxu1 %v5016_v49  ;;  %v2108_v58 = vadd.f32 %v2107_v57, %v6738_v40  ;;  %4193 = vmatpush1.bf16.msra.mxu0 %v5901_v46  ;;  %v5975_v46 = vld [vmem:[#allocation10 + $0x1b4] ss:$8 sps:$4 sm:$0xff]   ;;  %v5976_v49 = vld [vmem:[#allocation10 + $0x2b0] ss:$8 sps:$4 sm:$0xff]  }
 0x1cd   :  { %4234 = vmatpush1.bf16.msra.mxu1 %v5904_v47  ;;  %v2109_v59 = vpop.f32.mrf.mxu0  ;;  %4194 = vmatprep.subr.bf16.mxu0 %v5909_v52  ;;  %v5978_v47 = vld [vmem:[#allocation10 + $0x2b4] ss:$8 sps:$4 sm:$0xff]   ;;  %v5981_v52 = vld [vmem:[#allocation10 + $0x1a4] ss:$8 sps:$4 sm:$0xff]   ;;  %v5985_v57 = vld [vmem:[#allocation10 + $0x190] ss:$8 sps:$4 sm:$0xff]  }
 0x1ce   :  { %v2150_v60 = vpop.f32.mrf.mxu1  ;;  %4235 = vmatprep.subr.bf16.mxu1 %v5912_v53  ;;  %v6755_v63 = vadd.f32 %v2148_v21, %v2108_v58  ;;  %v2110_v0 = vadd.f32 %v2109_v59, %v6740_v45  ;;  %4224 = vmatprep.mubr.bf16.mxu0 %v5019_v56  ;;  %v5922_v45 = vld [vmem:[#allocation10 + $0x240] ss:$8 sps:$4 sm:$0xff]   ;;  %v5984_v53 = vld [vmem:[#allocation10 + $0x2a4] ss:$8 sps:$4 sm:$0xff]   ;;  %v5987_v56 = vld [vmem:[#allocation10 + $0x194] ss:$8 sps:$4 sm:$0xff]  }
 0x1cf   :  { %4265 = vmatprep.mubr.bf16.mxu1 %v5021_v30  ;;  %v2111_v3 = vpop.f32.mrf.mxu0  ;;  %v5990_v30 = vld [vmem:[#allocation10 + $0x294] ss:$8 sps:$4 sm:$0xff]   ;;  %v5988_v21 = vld [vmem:[#allocation10 + $0x290] ss:$8 sps:$4 sm:$0xff]   ;;  %v5993_v58 = vld [vmem:[#allocation10 + $0x184] ss:$8 sps:$4 sm:$0xff]  }
 0x1d0   :  { %v2152_v4 = vpop.f32.mrf.mxu1  ;;  %v6758_v5 = vadd.f32 %v2150_v60, %v2110_v0  ;;  %4195 = vmatpush1.bf16.msra.mxu0 %v5907_v54  ;;  %v5979_v54 = vld [vmem:[#allocation10 + $0x1a0] ss:$8 sps:$4 sm:$0xff]   ;;  %v5996_v59 = vld [vmem:[#allocation10 + $0x284] ss:$8 sps:$4 sm:$0xff]   ;;  %v6006_v0 = vld [vmem:[#allocation10 + $0x474] ss:$8 sps:$4 sm:$0xff]  }
 0x1d1   :  { %4236 = vmatpush1.bf16.msra.mxu1 %v5910_v55  ;;  %v2112_v40 = vpop.f32.mrf.mxu0  ;;  %4196 = vmatprep.subr.bf16.mxu0 %v5915_v61  ;;  %v5982_v55 = vld [vmem:[#allocation10 + $0x2a0] ss:$8 sps:$4 sm:$0xff]   ;;  %v6764_v3 = vld [vmem:[#allocation7 + $0x18] sm:$0xff]  ;;  %v6766_v4 = vld [vmem:[#allocation7 + $0x20] sm:$0xff] }
 0x1d2   :  { %v2153_v6 = vpop.f32.mrf.mxu1  ;;  %4237 = vmatprep.subr.bf16.mxu1 %v5918_v62  ;;  %v5991_v60 = vld [vmem:[#allocation10 + $0x180] ss:$8 sps:$4 sm:$0xff]   ;;  %v6003_v62 = vld [vmem:[#allocation10 + $0x374] ss:$8 sps:$4 sm:$0xff]   ;;  %v6001_v40 = vld [vmem:[#allocation10 + $0x370] ss:$8 sps:$4 sm:$0xff]  }
 0x1d3   :  { %v5994_v61 = vld [vmem:[#allocation10 + $0x280] ss:$8 sps:$4 sm:$0xff]   ;;  %v6004_v6 = vld [vmem:[#allocation10 + $0x470] ss:$8 sps:$4 sm:$0xff]  }
 0x1d4   :  { %4197 = vmatpush1.bf16.msra.mxu0 %v5913_v1  ;;  %v5018_v1 = vcombine.low %v6746_v50, %v6746_v50  ;;  %v5025_v50 = vcombine.high %v6766_v4, %v6766_v4 }
 0x1d5   :  { %4238 = vmatpush1.bf16.msra.mxu1 %v5916_v2  ;;  %4198 = vmatprep.subr.bf16.mxu0 %v5921_v7  ;;  %v5020_v2 = vcombine.low %v6748_v51, %v6748_v51  ;;  %v6009_v7 = vld [vmem:[#allocation10 + $0x364] ss:$8 sps:$4 sm:$0xff]  }
 0x1d6   :  { %4239 = vmatprep.subr.bf16.mxu1 %v5924_v8  ;;  %v6012_v8 = vld [vmem:[#allocation10 + $0x464] ss:$8 sps:$4 sm:$0xff]  }
 0x1d8   :  { %4199 = vmatpush1.bf16.msra.mxu0 %v5919_v9  ;;  %v5023_v9 = vcombine.high %v6764_v3, %v6764_v3 }
 0x1d9   :  { %4240 = vmatpush1.bf16.msra.mxu1 %v5922_v45  ;;  %4200 = vmatprep.subr.bf16.mxu0 %v5927_v10 }
 0x1da   :  { %4241 = vmatprep.subr.bf16.mxu1 %v5930_v11  ;;  %v6007_v11 = vld [vmem:[#allocation10 + $0x360] ss:$8 sps:$4 sm:$0xff]  }
 0x1dc   :  { %4201 = vmatpush1.bf16.msra.mxu0 %v5925_v12  ;;  %v6010_v12 = vld [vmem:[#allocation10 + $0x460] ss:$8 sps:$4 sm:$0xff]  }
 0x1dd   :  { %4242 = vmatpush1.bf16.msra.mxu1 %v5928_v13  ;;  %4202 = vmatprep.subr.bf16.mxu0 %v5933_v14 }
 0x1de   :  { %4243 = vmatprep.subr.bf16.mxu1 %v5936_v15  ;;  %v6015_v15 = vld [vmem:[#allocation10 + $0x354] ss:$8 sps:$4 sm:$0xff]  }
 0x1e0   :  { %4203 = vmatpush1.bf16.msra.mxu0 %v5931_v16  ;;  %v6018_v16 = vld [vmem:[#allocation10 + $0x454] ss:$8 sps:$4 sm:$0xff]  }
 0x1e1   :  { %4244 = vmatpush1.bf16.msra.mxu1 %v5934_v17  ;;  %4204 = vmatprep.subr.bf16.mxu0 %v5939_v18 }
 0x1e2   :  { %4245 = vmatprep.subr.bf16.mxu1 %v5942_v19 }
 0x1e4   :  { %4205 = vmatpush1.bf16.msra.mxu0 %v5937_v22 }
 0x1e5   :  { %4246 = vmatpush1.bf16.msra.mxu1 %v5940_v23  ;;  %4206 = vmatprep.subr.bf16.mxu0 %v5945_v24  ;;  %v6016_v24 = vld [vmem:[#allocation10 + $0x450] ss:$8 sps:$4 sm:$0xff]  }
 0x1e6   :  { %4247 = vmatprep.subr.bf16.mxu1 %v5948_v25 }
 0x1e8   :  { %4207 = vmatpush1.bf16.msra.mxu0 %v5943_v28 }
 0x1e9   :  { %4248 = vmatpush1.bf16.msra.mxu1 %v5946_v29  ;;  %4208 = vmatprep.subr.bf16.mxu0 %v5951_v31  ;;  %v6021_v29 = vld [vmem:[#allocation10 + $0x344] ss:$8 sps:$4 sm:$0xff]  }
 0x1ea   :  { %4249 = vmatprep.subr.bf16.mxu1 %v5954_v20  ;;  %v6024_v31 = vld [vmem:[#allocation10 + $0x444] ss:$8 sps:$4 sm:$0xff]   ;;  %v6019_v20 = vld [vmem:[#allocation10 + $0x340] ss:$8 sps:$4 sm:$0xff]  }
 0x1ec   :  { %4209 = vmatpush2.bf16.msra.mxu0 %v5949_v32  ;;  %v6027_v32 = vld [vmem:[#allocation10 + $0x334] ss:$8 sps:$4 sm:$0xff]  }
 0x1ed   :  { %4250 = vmatpush2.bf16.msra.mxu1 %v5952_v33  ;;  %4210 = vmatprep.subr.bf16.mxu0 %v5957_v34  ;;  %v6030_v33 = vld [vmem:[#allocation10 + $0x434] ss:$8 sps:$4 sm:$0xff]   ;;  %v6025_v34 = vld [vmem:[#allocation10 + $0x330] ss:$8 sps:$4 sm:$0xff]  }
 0x1ee   :  { %4251 = vmatprep.subr.bf16.mxu1 %v5960_v35  ;;  %v6028_v35 = vld [vmem:[#allocation10 + $0x430] ss:$8 sps:$4 sm:$0xff]  }
 0x1f0   :  { %4211 = vmatpush2.bf16.msra.mxu0 %v5955_v36  ;;  %v6033_v36 = vld [vmem:[#allocation10 + $0x324] ss:$8 sps:$4 sm:$0xff]  }
 0x1f1   :  { %4252 = vmatpush2.bf16.msra.mxu1 %v5958_v37  ;;  %4212 = vmatprep.subr.bf16.mxu0 %v5963_v26  ;;  %v6036_v37 = vld [vmem:[#allocation10 + $0x424] ss:$8 sps:$4 sm:$0xff]   ;;  %v6031_v26 = vld [vmem:[#allocation10 + $0x320] ss:$8 sps:$4 sm:$0xff]  }
 0x1f2   :  { %4253 = vmatprep.subr.bf16.mxu1 %v5966_v38  ;;  %v6034_v38 = vld [vmem:[#allocation10 + $0x420] ss:$8 sps:$4 sm:$0xff]  }
 0x1f4   :  { %4213 = vmatpush2.bf16.msra.mxu0 %v5961_v27  ;;  %v6039_v27 = vld [vmem:[#allocation10 + $0x314] ss:$8 sps:$4 sm:$0xff]  }
 0x1f5   :  { %4254 = vmatpush2.bf16.msra.mxu1 %v5964_v39  ;;  %4214 = vmatprep.subr.bf16.mxu0 %v5969_v41  ;;  %v6042_v39 = vld [vmem:[#allocation10 + $0x414] ss:$8 sps:$4 sm:$0xff]   ;;  %v6037_v41 = vld [vmem:[#allocation10 + $0x310] ss:$8 sps:$4 sm:$0xff]  }
 0x1f6   :  { %4255 = vmatprep.subr.bf16.mxu1 %v5972_v42  ;;  %v6040_v42 = vld [vmem:[#allocation10 + $0x410] ss:$8 sps:$4 sm:$0xff]  }
 0x1f8   :  { %4215 = vmatpush2.bf16.msra.mxu0 %v5967_v43  ;;  %v6045_v43 = vld [vmem:[#allocation10 + $0x304] ss:$8 sps:$4 sm:$0xff]  }
 0x1f9   :  { %4256 = vmatpush2.bf16.msra.mxu1 %v5970_v44  ;;  %4216 = vmatprep.subr.bf16.mxu0 %v5975_v46  ;;  %v6048_v44 = vld [vmem:[#allocation10 + $0x404] ss:$8 sps:$4 sm:$0xff]   ;;  %v6043_v46 = vld [vmem:[#allocation10 + $0x300] ss:$8 sps:$4 sm:$0xff]  }
 0x1fa   :  { %4257 = vmatprep.subr.bf16.mxu1 %v5978_v47  ;;  %v6046_v47 = vld [vmem:[#allocation10 + $0x400] ss:$8 sps:$4 sm:$0xff]  }
 0x1fc   :  { %4217 = vmatpush2.bf16.msra.mxu0 %v5973_v48  ;;  %v6051_v48 = vld [vmem:[#allocation10 + $0x3f4] ss:$8 sps:$4 sm:$0xff]  }
 0x1fd   :  { %4258 = vmatpush2.bf16.msra.mxu1 %v5976_v49  ;;  %4218 = vmatprep.subr.bf16.mxu0 %v5981_v52  ;;  %v6054_v49 = vld [vmem:[#allocation10 + $0x4f4] ss:$8 sps:$4 sm:$0xff]   ;;  %v6049_v52 = vld [vmem:[#allocation10 + $0x3f0] ss:$8 sps:$4 sm:$0xff]  }
 0x1fe   :  { %4259 = vmatprep.subr.bf16.mxu1 %v5984_v53  ;;  %v6052_v53 = vld [vmem:[#allocation10 + $0x4f0] ss:$8 sps:$4 sm:$0xff]  }
 0x200   :  { %4219 = vmatpush2.bf16.msra.mxu0 %v5979_v54  ;;  %v6057_v54 = vld [vmem:[#allocation10 + $0x3e4] ss:$8 sps:$4 sm:$0xff]  }
 0x201   :  { %4260 = vmatpush2.bf16.msra.mxu1 %v5982_v55  ;;  %4220 = vmatprep.subr.bf16.mxu0 %v5987_v56  ;;  %v6060_v55 = vld [vmem:[#allocation10 + $0x4e4] ss:$8 sps:$4 sm:$0xff]   ;;  %v6055_v56 = vld [vmem:[#allocation10 + $0x3e0] ss:$8 sps:$4 sm:$0xff]  }
 0x202   :  { %4261 = vmatprep.subr.bf16.mxu1 %v5990_v30  ;;  %v6058_v30 = vld [vmem:[#allocation10 + $0x4e0] ss:$8 sps:$4 sm:$0xff]  }
 0x204   :  { %4221 = vmatpush2.bf16.msra.mxu0 %v5985_v57  ;;  %v6063_v57 = vld [vmem:[#allocation10 + $0x3d4] ss:$8 sps:$4 sm:$0xff]  }
 0x205   :  { %4262 = vmatpush2.bf16.msra.mxu1 %v5988_v21  ;;  %4222 = vmatprep.subr.bf16.mxu0 %v5993_v58  ;;  %v6066_v21 = vld [vmem:[#allocation10 + $0x4d4] ss:$8 sps:$4 sm:$0xff]   ;;  %v6061_v58 = vld [vmem:[#allocation10 + $0x3d0] ss:$8 sps:$4 sm:$0xff]  }
 0x206   :  { %4263 = vmatprep.subr.bf16.mxu1 %v5996_v59  ;;  %v6064_v59 = vld [vmem:[#allocation10 + $0x4d0] ss:$8 sps:$4 sm:$0xff]  }
 0x208   :  { %4223 = vmatpush2.bf16.msra.mxu0 %v5991_v60  ;;  %v6069_v60 = vld [vmem:[#allocation10 + $0x3c4] ss:$8 sps:$4 sm:$0xff]  }
 0x209   :  { %4264 = vmatpush2.bf16.msra.mxu1 %v5994_v61  ;;  %4274 = vmatprep.subr.bf16.mxu0 %v6003_v62  ;;  %v6072_v61 = vld [vmem:[#allocation10 + $0x4c4] ss:$8 sps:$4 sm:$0xff]   ;;  %v6067_v62 = vld [vmem:[#allocation10 + $0x3c0] ss:$8 sps:$4 sm:$0xff]  }
 0x20a   :  { %4315 = vmatprep.subr.bf16.mxu1 %v6006_v0  ;;  %v6070_v0 = vld [vmem:[#allocation10 + $0x4c0] ss:$8 sps:$4 sm:$0xff]  }
 0x20b   :  { %v2189_v45 = vpop.f32.mrf.mxu0  ;;  %4225 = vmatmul.mubr.bf16.vlgmr.msra.gmra.mxu0 %v5018_v1  ;;  %v6075_v1 = vld [vmem:[#allocation10 + $0x3b4] ss:$8 sps:$4 sm:$0xff]  }
 0x20c   :  { %v2230_v51 = vpop.f32.mrf.mxu1  ;;  %4266 = vmatmul.mubr.bf16.vlgmr.msra.gmra.mxu1 %v5020_v2  ;;  %v2190_v10 = vadd.f32 %v2189_v45, %v6755_v63  ;;  %4275 = vmatpush1.bf16.msra.mxu0 %v6001_v40  ;;  %v6013_v63 = vld [vmem:[#allocation10 + $0x350] ss:$8 sps:$4 sm:$0xff]   ;;  %v6078_v2 = vld [vmem:[#allocation10 + $0x4b4] ss:$8 sps:$4 sm:$0xff]  }
 0x20d   :  { %4316 = vmatpush1.bf16.msra.mxu1 %v6004_v6  ;;  %v2191_v13 = vpop.f32.mrf.mxu0  ;;  %4276 = vmatprep.subr.bf16.mxu0 %v6009_v7  ;;  %v6073_v40 = vld [vmem:[#allocation10 + $0x3b0] ss:$8 sps:$4 sm:$0xff]   ;;  %v6081_v7 = vld [vmem:[#allocation10 + $0x3a4] ss:$8 sps:$4 sm:$0xff]   ;;  %v6087_v45 = vld [vmem:[#allocation10 + $0x394] ss:$8 sps:$4 sm:$0xff]  }
 0x20e   :  { %v2232_v14 = vpop.f32.mrf.mxu1  ;;  %4317 = vmatprep.subr.bf16.mxu1 %v6012_v8  ;;  %v6773_v17 = vadd.f32 %v2230_v51, %v2190_v10  ;;  %v2192_v18 = vadd.f32 %v2191_v13, %v6758_v5  ;;  %4306 = vmatprep.mubr.bf16.mxu0 %v5023_v9  ;;  %v6022_v5 = vld [vmem:[#allocation10 + $0x440] ss:$8 sps:$4 sm:$0xff]   ;;  %v6076_v6 = vld [vmem:[#allocation10 + $0x4b0] ss:$8 sps:$4 sm:$0xff]   ;;  %v6084_v8 = vld [vmem:[#allocation10 + $0x4a4] ss:$8 sps:$4 sm:$0xff]  }
 0x20f   :  { %4347 = vmatprep.mubr.bf16.mxu1 %v5025_v50  ;;  %v2193_v19 = vpop.f32.mrf.mxu0  ;;  %v6079_v9 = vld [vmem:[#allocation10 + $0x3a0] ss:$8 sps:$4 sm:$0xff]   ;;  %v6090_v51 = vld [vmem:[#allocation10 + $0x494] ss:$8 sps:$4 sm:$0xff]   ;;  %v6085_v10 = vld [vmem:[#allocation10 + $0x390] ss:$8 sps:$4 sm:$0xff]  }
 0x210   :  { %v2234_v22 = vpop.f32.mrf.mxu1  ;;  %v6776_v23 = vadd.f32 %v2232_v14, %v2192_v18  ;;  %4277 = vmatpush1.bf16.msra.mxu0 %v6007_v11  ;;  %v6082_v50 = vld [vmem:[#allocation10 + $0x4a0] ss:$8 sps:$4 sm:$0xff]   ;;  %v6088_v11 = vld [vmem:[#allocation10 + $0x490] ss:$8 sps:$4 sm:$0xff]   ;;  %v6096_v13 = vld [vmem:[#allocation10 + $0x484] ss:$8 sps:$4 sm:$0xff]   ;;  %v5022_v19 = vcombine.low %v6764_v3, %v6764_v3 }
 0x211   :  { %4318 = vmatpush1.bf16.msra.mxu1 %v6010_v12  ;;  %v2194_v25 = vpop.f32.mrf.mxu0  ;;  %4278 = vmatprep.subr.bf16.mxu0 %v6015_v15  ;;  %v6093_v12 = vld [vmem:[#allocation10 + $0x384] ss:$8 sps:$4 sm:$0xff]   ;;  %v6091_v14 = vld [vmem:[#allocation10 + $0x380] ss:$8 sps:$4 sm:$0xff]   ;;  %v6106_v18 = vld [vmem:[#allocation10 + $0x674] ss:$8 sps:$4 sm:$0xff]   ;;  %v5024_v22 = vcombine.low %v6766_v4, %v6766_v4 }
 0x212   :  { %v2235_v28 = vpop.f32.mrf.mxu1  ;;  %4319 = vmatprep.subr.bf16.mxu1 %v6018_v16  ;;  %v6094_v15 = vld [vmem:[#allocation10 + $0x480] ss:$8 sps:$4 sm:$0xff]   ;;  %v6103_v16 = vld [vmem:[#allocation10 + $0x574] ss:$8 sps:$4 sm:$0xff]   ;;  %v6101_v25 = vld [vmem:[#allocation10 + $0x570] ss:$8 sps:$4 sm:$0xff]  }
 0x213   :  { %v6104_v28 = vld [vmem:[#allocation10 + $0x670] ss:$8 sps:$4 sm:$0xff]  }
 0x214   :  { %4279 = vmatpush1.bf16.msra.mxu0 %v6013_v63  ;;  %v6782_v63 = vld [vmem:[#allocation7 + $0x28] sm:$0xff] }
 0x215   :  { %4320 = vmatpush1.bf16.msra.mxu1 %v6016_v24  ;;  %4280 = vmatprep.subr.bf16.mxu0 %v6021_v29  ;;  %v6784_v24 = vld [vmem:[#allocation7 + $0x30] sm:$0xff] }
 0x216   :  { %4321 = vmatprep.subr.bf16.mxu1 %v6024_v31  ;;  %v6109_v29 = vld [vmem:[#allocation10 + $0x564] ss:$8 sps:$4 sm:$0xff]   ;;  %v5029_v3 = vcombine.high %v6784_v24, %v6784_v24 }
 0x217   :  { %v6112_v31 = vld [vmem:[#allocation10 + $0x664] ss:$8 sps:$4 sm:$0xff]  }
 0x218   :  { %4281 = vmatpush1.bf16.msra.mxu0 %v6019_v20  ;;  %v5027_v20 = vcombine.high %v6782_v63, %v6782_v63 }
 0x219   :  { %4322 = vmatpush1.bf16.msra.mxu1 %v6022_v5  ;;  %4282 = vmatprep.subr.bf16.mxu0 %v6027_v32  ;;  %v6107_v32 = vld [vmem:[#allocation10 + $0x560] ss:$8 sps:$4 sm:$0xff]  }
 0x21a   :  { %4323 = vmatprep.subr.bf16.mxu1 %v6030_v33  ;;  %v6110_v33 = vld [vmem:[#allocation10 + $0x660] ss:$8 sps:$4 sm:$0xff]  }
 0x21c   :  { %4283 = vmatpush1.bf16.msra.mxu0 %v6025_v34 }
 0x21d   :  { %4324 = vmatpush1.bf16.msra.mxu1 %v6028_v35  ;;  %4284 = vmatprep.subr.bf16.mxu0 %v6033_v36  ;;  %v6115_v36 = vld [vmem:[#allocation10 + $0x554] ss:$8 sps:$4 sm:$0xff]  }
 0x21e   :  { %4325 = vmatprep.subr.bf16.mxu1 %v6036_v37  ;;  %v6118_v37 = vld [vmem:[#allocation10 + $0x654] ss:$8 sps:$4 sm:$0xff]  }
 0x220   :  { %4285 = vmatpush1.bf16.msra.mxu0 %v6031_v26 }
 0x221   :  { %4326 = vmatpush1.bf16.msra.mxu1 %v6034_v38  ;;  %4286 = vmatprep.subr.bf16.mxu0 %v6039_v27 }
 0x222   :  { %4327 = vmatprep.subr.bf16.mxu1 %v6042_v39 }
 0x224   :  { %4287 = vmatpush1.bf16.msra.mxu0 %v6037_v41  ;;  %v6113_v41 = vld [vmem:[#allocation10 + $0x550] ss:$8 sps:$4 sm:$0xff]  }
 0x225   :  { %4328 = vmatpush1.bf16.msra.mxu1 %v6040_v42  ;;  %4288 = vmatprep.subr.bf16.mxu0 %v6045_v43  ;;  %v6116_v42 = vld [vmem:[#allocation10 + $0x650] ss:$8 sps:$4 sm:$0xff]  }
 0x226   :  { %4329 = vmatprep.subr.bf16.mxu1 %v6048_v44 }
 0x228   :  { %4289 = vmatpush1.bf16.msra.mxu0 %v6043_v46  ;;  %v6121_v46 = vld [vmem:[#allocation10 + $0x544] ss:$8 sps:$4 sm:$0xff]  }
 0x229   :  { %4330 = vmatpush1.bf16.msra.mxu1 %v6046_v47  ;;  %4290 = vmatprep.subr.bf16.mxu0 %v6051_v48  ;;  %v6124_v47 = vld [vmem:[#allocation10 + $0x644] ss:$8 sps:$4 sm:$0xff]   ;;  %v6119_v48 = vld [vmem:[#allocation10 + $0x540] ss:$8 sps:$4 sm:$0xff]  }
 0x22a   :  { %4331 = vmatprep.subr.bf16.mxu1 %v6054_v49  ;;  %v6127_v49 = vld [vmem:[#allocation10 + $0x534] ss:$8 sps:$4 sm:$0xff]  }
 0x22c   :  { %4291 = vmatpush2.bf16.msra.mxu0 %v6049_v52  ;;  %v6130_v52 = vld [vmem:[#allocation10 + $0x634] ss:$8 sps:$4 sm:$0xff]  }
 0x22d   :  { %4332 = vmatpush2.bf16.msra.mxu1 %v6052_v53  ;;  %4292 = vmatprep.subr.bf16.mxu0 %v6057_v54  ;;  %v6125_v53 = vld [vmem:[#allocation10 + $0x530] ss:$8 sps:$4 sm:$0xff]  }
 0x22e   :  { %4333 = vmatprep.subr.bf16.mxu1 %v6060_v55  ;;  %v6128_v54 = vld [vmem:[#allocation10 + $0x630] ss:$8 sps:$4 sm:$0xff]   ;;  %v6133_v55 = vld [vmem:[#allocation10 + $0x524] ss:$8 sps:$4 sm:$0xff]  }
 0x230   :  { %4293 = vmatpush2.bf16.msra.mxu0 %v6055_v56  ;;  %v6136_v56 = vld [vmem:[#allocation10 + $0x624] ss:$8 sps:$4 sm:$0xff]  }
 0x231   :  { %4334 = vmatpush2.bf16.msra.mxu1 %v6058_v30  ;;  %4294 = vmatprep.subr.bf16.mxu0 %v6063_v57  ;;  %v6131_v30 = vld [vmem:[#allocation10 + $0x520] ss:$8 sps:$4 sm:$0xff]  }
 0x232   :  { %4335 = vmatprep.subr.bf16.mxu1 %v6066_v21  ;;  %v6134_v57 = vld [vmem:[#allocation10 + $0x620] ss:$8 sps:$4 sm:$0xff]   ;;  %v6139_v21 = vld [vmem:[#allocation10 + $0x514] ss:$8 sps:$4 sm:$0xff]  }
 0x234   :  { %4295 = vmatpush2.bf16.msra.mxu0 %v6061_v58  ;;  %v6142_v58 = vld [vmem:[#allocation10 + $0x614] ss:$8 sps:$4 sm:$0xff]  }
 0x235   :  { %4336 = vmatpush2.bf16.msra.mxu1 %v6064_v59  ;;  %4296 = vmatprep.subr.bf16.mxu0 %v6069_v60  ;;  %v6137_v59 = vld [vmem:[#allocation10 + $0x510] ss:$8 sps:$4 sm:$0xff]  }
 0x236   :  { %4337 = vmatprep.subr.bf16.mxu1 %v6072_v61  ;;  %v6140_v60 = vld [vmem:[#allocation10 + $0x610] ss:$8 sps:$4 sm:$0xff]   ;;  %v6145_v61 = vld [vmem:[#allocation10 + $0x504] ss:$8 sps:$4 sm:$0xff]  }
 0x238   :  { %4297 = vmatpush2.bf16.msra.mxu0 %v6067_v62  ;;  %v6148_v62 = vld [vmem:[#allocation10 + $0x604] ss:$8 sps:$4 sm:$0xff]  }
 0x239   :  { %4338 = vmatpush2.bf16.msra.mxu1 %v6070_v0  ;;  %4298 = vmatprep.subr.bf16.mxu0 %v6075_v1  ;;  %v6143_v0 = vld [vmem:[#allocation10 + $0x500] ss:$8 sps:$4 sm:$0xff]  }
 0x23a   :  { %4339 = vmatprep.subr.bf16.mxu1 %v6078_v2  ;;  %v6146_v1 = vld [vmem:[#allocation10 + $0x600] ss:$8 sps:$4 sm:$0xff]   ;;  %v6151_v2 = vld [vmem:[#allocation10 + $0x5f4] ss:$8 sps:$4 sm:$0xff]  }
 0x23c   :  { %4299 = vmatpush2.bf16.msra.mxu0 %v6073_v40  ;;  %v6154_v40 = vld [vmem:[#allocation10 + $0x6f4] ss:$8 sps:$4 sm:$0xff]  }
 0x23d   :  { %4340 = vmatpush2.bf16.msra.mxu1 %v6076_v6  ;;  %4300 = vmatprep.subr.bf16.mxu0 %v6081_v7  ;;  %v6149_v6 = vld [vmem:[#allocation10 + $0x5f0] ss:$8 sps:$4 sm:$0xff]  }
 0x23e   :  { %4341 = vmatprep.subr.bf16.mxu1 %v6084_v8  ;;  %v6152_v7 = vld [vmem:[#allocation10 + $0x6f0] ss:$8 sps:$4 sm:$0xff]   ;;  %v6157_v8 = vld [vmem:[#allocation10 + $0x5e4] ss:$8 sps:$4 sm:$0xff]  }
 0x240   :  { %4301 = vmatpush2.bf16.msra.mxu0 %v6079_v9  ;;  %v6160_v9 = vld [vmem:[#allocation10 + $0x6e4] ss:$8 sps:$4 sm:$0xff]  }
 0x241   :  { %4342 = vmatpush2.bf16.msra.mxu1 %v6082_v50  ;;  %4302 = vmatprep.subr.bf16.mxu0 %v6087_v45  ;;  %v6155_v50 = vld [vmem:[#allocation10 + $0x5e0] ss:$8 sps:$4 sm:$0xff]  }
 0x242   :  { %4343 = vmatprep.subr.bf16.mxu1 %v6090_v51  ;;  %v6158_v45 = vld [vmem:[#allocation10 + $0x6e0] ss:$8 sps:$4 sm:$0xff]   ;;  %v6163_v51 = vld [vmem:[#allocation10 + $0x5d4] ss:$8 sps:$4 sm:$0xff]  }
 0x244   :  { %4303 = vmatpush2.bf16.msra.mxu0 %v6085_v10  ;;  %v6166_v10 = vld [vmem:[#allocation10 + $0x6d4] ss:$8 sps:$4 sm:$0xff]  }
 0x245   :  { %4344 = vmatpush2.bf16.msra.mxu1 %v6088_v11  ;;  %4304 = vmatprep.subr.bf16.mxu0 %v6093_v12  ;;  %v6161_v11 = vld [vmem:[#allocation10 + $0x5d0] ss:$8 sps:$4 sm:$0xff]  }
 0x246   :  { %4345 = vmatprep.subr.bf16.mxu1 %v6096_v13  ;;  %v6164_v12 = vld [vmem:[#allocation10 + $0x6d0] ss:$8 sps:$4 sm:$0xff]   ;;  %v6169_v13 = vld [vmem:[#allocation10 + $0x5c4] ss:$8 sps:$4 sm:$0xff]  }
 0x248   :  { %4305 = vmatpush2.bf16.msra.mxu0 %v6091_v14  ;;  %v6172_v14 = vld [vmem:[#allocation10 + $0x6c4] ss:$8 sps:$4 sm:$0xff]  }
 0x249   :  { %4346 = vmatpush2.bf16.msra.mxu1 %v6094_v15  ;;  %4356 = vmatprep.subr.bf16.mxu0 %v6103_v16  ;;  %v6167_v15 = vld [vmem:[#allocation10 + $0x5c0] ss:$8 sps:$4 sm:$0xff]  }
 0x24a   :  { %4397 = vmatprep.subr.bf16.mxu1 %v6106_v18  ;;  %v6170_v16 = vld [vmem:[#allocation10 + $0x6c0] ss:$8 sps:$4 sm:$0xff]   ;;  %v6175_v18 = vld [vmem:[#allocation10 + $0x5b4] ss:$8 sps:$4 sm:$0xff]  }
 0x24b   :  { %v6790_v5 = vpop.f32.mrf.mxu0  ;;  %4307 = vmatmul.mubr.bf16.vlgmr.msra.gmra.mxu0 %v5022_v19  ;;  %v6178_v19 = vld [vmem:[#allocation10 + $0x6b4] ss:$8 sps:$4 sm:$0xff]  }
 0x24c   :  { %v6792_v4 = vpop.f32.mrf.mxu1  ;;  %4348 = vmatmul.mubr.bf16.vlgmr.msra.gmra.mxu1 %v5024_v22  ;;  %4357 = vmatpush1.bf16.msra.mxu0 %v6101_v25  ;;  %v6173_v22 = vld [vmem:[#allocation10 + $0x5b0] ss:$8 sps:$4 sm:$0xff]  }
 0x24d   :  { %4398 = vmatpush1.bf16.msra.mxu1 %v6104_v28  ;;  %v2273_v34 = vpop.f32.mrf.mxu0  ;;  %4358 = vmatprep.subr.bf16.mxu0 %v6109_v29  ;;  %v6176_v25 = vld [vmem:[#allocation10 + $0x6b0] ss:$8 sps:$4 sm:$0xff]   ;;  %v6181_v28 = vld [vmem:[#allocation10 + $0x5a4] ss:$8 sps:$4 sm:$0xff]  }
 0x24e   :  { %v2314_v35 = vpop.f32.mrf.mxu1  ;;  %4399 = vmatprep.subr.bf16.mxu1 %v6112_v31  ;;  %v2274_v26 = vadd.f32 %v2273_v34, %v6776_v23  ;;  %4388 = vmatprep.mubr.bf16.mxu0 %v5027_v20  ;;  %v6122_v23 = vld [vmem:[#allocation10 + $0x640] ss:$8 sps:$4 sm:$0xff]   ;;  %v6184_v29 = vld [vmem:[#allocation10 + $0x6a4] ss:$8 sps:$4 sm:$0xff]   ;;  %v6188_v34 = vld [vmem:[#allocation10 + $0x690] ss:$8 sps:$4 sm:$0xff]  }
 0x24f   :  { %4429 = vmatprep.mubr.bf16.mxu1 %v5029_v3  ;;  %v2275_v38 = vpop.f32.mrf.mxu0  ;;  %v6179_v31 = vld [vmem:[#allocation10 + $0x5a0] ss:$8 sps:$4 sm:$0xff]   ;;  %v6187_v3 = vld [vmem:[#allocation10 + $0x594] ss:$8 sps:$4 sm:$0xff]  }
 0x250   :  { %v2316_v27 = vpop.f32.mrf.mxu1  ;;  %v6795_v39 = vadd.f32 %v2314_v35, %v2274_v26  ;;  %4359 = vmatpush1.bf16.msra.mxu0 %v6107_v32  ;;  %v6182_v20 = vld [vmem:[#allocation10 + $0x6a0] ss:$8 sps:$4 sm:$0xff]   ;;  %v6190_v32 = vld [vmem:[#allocation10 + $0x694] ss:$8 sps:$4 sm:$0xff]   ;;  %v6193_v35 = vld [vmem:[#allocation10 + $0x584] ss:$8 sps:$4 sm:$0xff]  }
 0x251   :  { %4400 = vmatpush1.bf16.msra.mxu1 %v6110_v33  ;;  %v2276_v43 = vpop.f32.mrf.mxu0  ;;  %4360 = vmatprep.subr.bf16.mxu0 %v6115_v36  ;;  %v6185_v33 = vld [vmem:[#allocation10 + $0x590] ss:$8 sps:$4 sm:$0xff]   ;;  %v6196_v36 = vld [vmem:[#allocation10 + $0x684] ss:$8 sps:$4 sm:$0xff]   ;;  %v6194_v26 = vld [vmem:[#allocation10 + $0x680] ss:$8 sps:$4 sm:$0xff]  }
 0x252   :  { %v2317_v44 = vpop.f32.mrf.mxu1  ;;  %4401 = vmatprep.subr.bf16.mxu1 %v6118_v37  ;;  %v6191_v37 = vld [vmem:[#allocation10 + $0x580] ss:$8 sps:$4 sm:$0xff]   ;;  %v6203_v38 = vld [vmem:[#allocation10 + $0x774] ss:$8 sps:$4 sm:$0xff]   ;;  %v5028_v43 = vcombine.low %v6784_v24, %v6784_v24 }
 0x253   :  { %v6206_v27 = vld [vmem:[#allocation10 + $0x874] ss:$8 sps:$4 sm:$0xff]  }
 0x254   :  { %4361 = vmatpush1.bf16.msra.mxu0 %v6113_v41  ;;  %v2272_v41 = vadd.f32 %v6790_v5, %v6773_v17  ;;  %v6803_v44 = vld [vmem:[#allocation7 + $0x38] sm:$0xff] }
 0x255   :  { %4402 = vmatpush1.bf16.msra.mxu1 %v6116_v42  ;;  %4362 = vmatprep.subr.bf16.mxu0 %v6121_v46  ;;  %v5026_v42 = vcombine.low %v6782_v63, %v6782_v63  ;;  %v6805_v46 = vld [vmem:[#allocation7 + $0x40] sm:$0xff]  ;;  %v5031_v63 = vcombine.high %v6803_v44, %v6803_v44 }
 0x256   :  { %4403 = vmatprep.subr.bf16.mxu1 %v6124_v47  ;;  %v6201_v47 = vld [vmem:[#allocation10 + $0x770] ss:$8 sps:$4 sm:$0xff]   ;;  %v2313_v17 = vadd.f32 %v6792_v4, %v2272_v41  ;;  %v5033_v24 = vcombine.high %v6805_v46, %v6805_v46  ;;  %v6215_v4 = vld [vmem:[#allocation10 + $0x754] ss:$8 sps:$4 sm:$0xff]  }
 0x257   :  { %v6264_v41 = vld [vmem:[#allocation10 + $0x8d0] ss:$8 sps:$4 sm:$0xff]  }
 0x258   :  { %4363 = vmatpush1.bf16.msra.mxu0 %v6119_v48  ;;  %v6204_v48 = vld [vmem:[#allocation10 + $0x870] ss:$8 sps:$4 sm:$0xff]  }
 0x259   :  { %4404 = vmatpush1.bf16.msra.mxu1 %v6122_v23  ;;  %4364 = vmatprep.subr.bf16.mxu0 %v6127_v49  ;;  %v6209_v23 = vld [vmem:[#allocation10 + $0x764] ss:$8 sps:$4 sm:$0xff]  }
 0x25a   :  { %4405 = vmatprep.subr.bf16.mxu1 %v6130_v52  ;;  %v6212_v49 = vld [vmem:[#allocation10 + $0x864] ss:$8 sps:$4 sm:$0xff]  }
 0x25c   :  { %4365 = vmatpush1.bf16.msra.mxu0 %v6125_v53  ;;  %v5322_v53 = vld [vmem:[#allocation12] ss:$0 sm:$0xff] }
 0x25d   :  { %4406 = vmatpush1.bf16.msra.mxu1 %v6128_v54  ;;  %4366 = vmatprep.subr.bf16.mxu0 %v6133_v55  ;;  %v6207_v55 = vld [vmem:[#allocation10 + $0x760] ss:$8 sps:$4 sm:$0xff]  }
 0x25e   :  { %4407 = vmatprep.subr.bf16.mxu1 %v6136_v56  ;;  %v6210_v56 = vld [vmem:[#allocation10 + $0x860] ss:$8 sps:$4 sm:$0xff]  }
 0x260   :  { %4367 = vmatpush1.bf16.msra.mxu0 %v6131_v30 }
 0x261   :  { %4408 = vmatpush1.bf16.msra.mxu1 %v6134_v57  ;;  %4368 = vmatprep.subr.bf16.mxu0 %v6139_v21  ;;  %v6218_v21 = vld [vmem:[#allocation10 + $0x854] ss:$8 sps:$4 sm:$0xff]  }
 0x262   :  { %4409 = vmatprep.subr.bf16.mxu1 %v6142_v58 }
 0x264   :  { %4369 = vmatpush1.bf16.msra.mxu0 %v6137_v59 }
 0x265   :  { %4410 = vmatpush1.bf16.msra.mxu1 %v6140_v60  ;;  %4370 = vmatprep.subr.bf16.mxu0 %v6145_v61 }
 0x266   :  { %4411 = vmatprep.subr.bf16.mxu1 %v6148_v62  ;;  %v5324_v62 = vld [vmem:[#allocation16] ss:$0 sm:$0xff] }
 0x268   :  { %4371 = vmatpush1.bf16.msra.mxu0 %v6143_v0  ;;  %v6213_v0 = vld [vmem:[#allocation10 + $0x750] ss:$8 sps:$4 sm:$0xff]  }
 0x269   :  { %4412 = vmatpush1.bf16.msra.mxu1 %v6146_v1  ;;  %4372 = vmatprep.subr.bf16.mxu0 %v6151_v2  ;;  %v6216_v1 = vld [vmem:[#allocation10 + $0x850] ss:$8 sps:$4 sm:$0xff]  }
 0x26a   :  { %4413 = vmatprep.subr.bf16.mxu1 %v6154_v40 }
 0x26c   :  { %4373 = vmatpush2.bf16.msra.mxu0 %v6149_v6 }
 0x26d   :  { %4414 = vmatpush2.bf16.msra.mxu1 %v6152_v7  ;;  %4374 = vmatprep.subr.bf16.mxu0 %v6157_v8  ;;  %v6221_v7 = vld [vmem:[#allocation10 + $0x744] ss:$8 sps:$4 sm:$0xff]  }
 0x26e   :  { %4415 = vmatprep.subr.bf16.mxu1 %v6160_v9  ;;  %v6224_v9 = vld [vmem:[#allocation10 + $0x844] ss:$8 sps:$4 sm:$0xff]  }
 0x270   :  { %4375 = vmatpush2.bf16.msra.mxu0 %v6155_v50  ;;  %v6222_v50 = vld [vmem:[#allocation10 + $0x840] ss:$8 sps:$4 sm:$0xff]  }
 0x271   :  { %4416 = vmatpush2.bf16.msra.mxu1 %v6158_v45  ;;  %4376 = vmatprep.subr.bf16.mxu0 %v6163_v51  ;;  %v6227_v45 = vld [vmem:[#allocation10 + $0x734] ss:$8 sps:$4 sm:$0xff]  }
 0x272   :  { %4417 = vmatprep.subr.bf16.mxu1 %v6166_v10  ;;  %v6230_v51 = vld [vmem:[#allocation10 + $0x834] ss:$8 sps:$4 sm:$0xff]   ;;  %v6225_v10 = vld [vmem:[#allocation10 + $0x730] ss:$8 sps:$4 sm:$0xff]  }
 0x274   :  { %4377 = vmatpush2.bf16.msra.mxu0 %v6161_v11  ;;  %v6228_v11 = vld [vmem:[#allocation10 + $0x830] ss:$8 sps:$4 sm:$0xff]  }
 0x275   :  { %4418 = vmatpush2.bf16.msra.mxu1 %v6164_v12  ;;  %4378 = vmatprep.subr.bf16.mxu0 %v6169_v13  ;;  %v6233_v12 = vld [vmem:[#allocation10 + $0x724] ss:$8 sps:$4 sm:$0xff]  }
 0x276   :  { %4419 = vmatprep.subr.bf16.mxu1 %v6172_v14  ;;  %v6236_v13 = vld [vmem:[#allocation10 + $0x824] ss:$8 sps:$4 sm:$0xff]   ;;  %v6231_v14 = vld [vmem:[#allocation10 + $0x720] ss:$8 sps:$4 sm:$0xff]  }
 0x278   :  { %4379 = vmatpush2.bf16.msra.mxu0 %v6167_v15  ;;  %v6234_v15 = vld [vmem:[#allocation10 + $0x820] ss:$8 sps:$4 sm:$0xff]  }
 0x279   :  { %4420 = vmatpush2.bf16.msra.mxu1 %v6170_v16  ;;  %4380 = vmatprep.subr.bf16.mxu0 %v6175_v18  ;;  %v6239_v16 = vld [vmem:[#allocation10 + $0x714] ss:$8 sps:$4 sm:$0xff]  }
 0x27a   :  { %4421 = vmatprep.subr.bf16.mxu1 %v6178_v19  ;;  %v6242_v18 = vld [vmem:[#allocation10 + $0x814] ss:$8 sps:$4 sm:$0xff]   ;;  %v6237_v19 = vld [vmem:[#allocation10 + $0x710] ss:$8 sps:$4 sm:$0xff]  }
 0x27c   :  { %4381 = vmatpush2.bf16.msra.mxu0 %v6173_v22  ;;  %v6240_v22 = vld [vmem:[#allocation10 + $0x810] ss:$8 sps:$4 sm:$0xff]  }
 0x27d   :  { %4422 = vmatpush2.bf16.msra.mxu1 %v6176_v25  ;;  %4382 = vmatprep.subr.bf16.mxu0 %v6181_v28  ;;  %v6245_v25 = vld [vmem:[#allocation10 + $0x704] ss:$8 sps:$4 sm:$0xff]  }
 0x27e   :  { %4423 = vmatprep.subr.bf16.mxu1 %v6184_v29  ;;  %v6248_v28 = vld [vmem:[#allocation10 + $0x804] ss:$8 sps:$4 sm:$0xff]   ;;  %v6243_v29 = vld [vmem:[#allocation10 + $0x700] ss:$8 sps:$4 sm:$0xff]  }
 0x280   :  { %4383 = vmatpush2.bf16.msra.mxu0 %v6179_v31  ;;  %v6246_v31 = vld [vmem:[#allocation10 + $0x800] ss:$8 sps:$4 sm:$0xff]  }
 0x281   :  { %4424 = vmatpush2.bf16.msra.mxu1 %v6182_v20  ;;  %4384 = vmatprep.subr.bf16.mxu0 %v6187_v3  ;;  %v6251_v20 = vld [vmem:[#allocation10 + $0x7f4] ss:$8 sps:$4 sm:$0xff]  }
 0x282   :  { %4425 = vmatprep.subr.bf16.mxu1 %v6190_v32  ;;  %v6254_v3 = vld [vmem:[#allocation10 + $0x8f4] ss:$8 sps:$4 sm:$0xff]   ;;  %v6249_v32 = vld [vmem:[#allocation10 + $0x7f0] ss:$8 sps:$4 sm:$0xff]  }
 0x284   :  { %4385 = vmatpush2.bf16.msra.mxu0 %v6185_v33  ;;  %v6252_v33 = vld [vmem:[#allocation10 + $0x8f0] ss:$8 sps:$4 sm:$0xff]  }
 0x285   :  { %4426 = vmatpush2.bf16.msra.mxu1 %v6188_v34  ;;  %4386 = vmatprep.subr.bf16.mxu0 %v6193_v35  ;;  %v6257_v34 = vld [vmem:[#allocation10 + $0x7e4] ss:$8 sps:$4 sm:$0xff]  }
 0x286   :  { %4427 = vmatprep.subr.bf16.mxu1 %v6196_v36  ;;  %v6260_v35 = vld [vmem:[#allocation10 + $0x8e4] ss:$8 sps:$4 sm:$0xff]   ;;  %v6255_v36 = vld [vmem:[#allocation10 + $0x7e0] ss:$8 sps:$4 sm:$0xff]  }
 0x288   :  { %4387 = vmatpush2.bf16.msra.mxu0 %v6191_v37  ;;  %v6258_v37 = vld [vmem:[#allocation10 + $0x8e0] ss:$8 sps:$4 sm:$0xff]  }
 0x289   :  { %4428 = vmatpush2.bf16.msra.mxu1 %v6194_v26  ;;  %4438 = vmatprep.subr.bf16.mxu0 %v6203_v38  ;;  %v6263_v26 = vld [vmem:[#allocation10 + $0x7d4] ss:$8 sps:$4 sm:$0xff]  }
 0x28a   :  { %4479 = vmatprep.subr.bf16.mxu1 %v6206_v27  ;;  %v6266_v38 = vld [vmem:[#allocation10 + $0x8d4] ss:$8 sps:$4 sm:$0xff]   ;;  %v6261_v27 = vld [vmem:[#allocation10 + $0x7d0] ss:$8 sps:$4 sm:$0xff]  }
 0x28b   :  { %v2353_v5 = vpop.f32.mrf.mxu0  ;;  %4389 = vmatmul.mubr.bf16.vlgmr.msra.gmra.mxu0 %v5026_v42  ;;  %v6269_v42 = vld [vmem:[#allocation10 + $0x7c4] ss:$8 sps:$4 sm:$0xff]  }
 0x28c   :  { %v6812_v52 = vpop.f32.mrf.mxu1  ;;  %4430 = vmatmul.mubr.bf16.vlgmr.msra.gmra.mxu1 %v5028_v43  ;;  %v2354_v54 = vadd.f32 %v2353_v5, %v2313_v17  ;;  %4439 = vmatpush1.bf16.msra.mxu0 %v6201_v47  ;;  %v6272_v43 = vld [vmem:[#allocation10 + $0x8c4] ss:$8 sps:$4 sm:$0xff]   ;;  %v6267_v47 = vld [vmem:[#allocation10 + $0x7c0] ss:$8 sps:$4 sm:$0xff]   ;;  %v6273_v17 = vld [vmem:[#allocation10 + $0x7b0] ss:$8 sps:$4 sm:$0xff]  }
 0x28d   :  { %4480 = vmatpush1.bf16.msra.mxu1 %v6204_v48  ;;  %v2355_v30 = vpop.f32.mrf.mxu0  ;;  %4440 = vmatprep.subr.bf16.mxu0 %v6209_v23  ;;  %v6270_v48 = vld [vmem:[#allocation10 + $0x8c0] ss:$8 sps:$4 sm:$0xff]   ;;  %v6275_v23 = vld [vmem:[#allocation10 + $0x7b4] ss:$8 sps:$4 sm:$0xff]   ;;  %v6284_v5 = vld [vmem:[#allocation10 + $0x8a4] ss:$8 sps:$4 sm:$0xff]  }
 0x28e   :  { %v6814_v57 = vpop.f32.mrf.mxu1  ;;  %4481 = vmatprep.subr.bf16.mxu1 %v6212_v49  ;;  %v6817_v58 = vadd.f32 %v2355_v30, %v6795_v39  ;;  %v4527_v59 = vadd.f32 %v5322_v53, %v2354_v54  ;;  %4470 = vmatprep.mubr.bf16.mxu0 %v5031_v63  ;;  %v6219_v39 = vld [vmem:[#allocation10 + $0x740] ss:$8 sps:$4 sm:$0xff]   ;;  %v6278_v49 = vld [vmem:[#allocation10 + $0x8b4] ss:$8 sps:$4 sm:$0xff]   ;;  %v6276_v63 = vld [vmem:[#allocation10 + $0x8b0] ss:$8 sps:$4 sm:$0xff]  }
 0x28f   :  { %4511 = vmatprep.mubr.bf16.mxu1 %v5033_v24  ;;  %v2357_v60 = vpop.f32.mrf.mxu0  ;;  %v6281_v24 = vld [vmem:[#allocation10 + $0x7a4] ss:$8 sps:$4 sm:$0xff]   ;;  %v6279_v53 = vld [vmem:[#allocation10 + $0x7a0] ss:$8 sps:$4 sm:$0xff]   ;;  %v6285_v30 = vld [vmem:[#allocation10 + $0x790] ss:$8 sps:$4 sm:$0xff]  }
 0x290   :  { %v4189_v61 = vpop.f32.mrf.mxu1  ;;  %4441 = vmatpush1.bf16.msra.mxu0 %v6207_v55  ;;  %v4528_v2 = vmax.f32 %v4527_v59, 0.0  ;;  %v6282_v54 = vld [vmem:[#allocation10 + $0x8a0] ss:$8 sps:$4 sm:$0xff]   ;;  %v6287_v55 = vld [vmem:[#allocation10 + $0x794] ss:$8 sps:$4 sm:$0xff]  }
 0x291   :  { %4482 = vmatpush1.bf16.msra.mxu1 %v6210_v56  ;;  %v2358_v40 = vpop.f32.mrf.mxu0  ;;  %4442 = vmatprep.subr.bf16.mxu0 %v6215_v4  ;;  %v6290_v56 = vld [vmem:[#allocation10 + $0x894] ss:$8 sps:$4 sm:$0xff]   ;;  %v6288_v4 = vld [vmem:[#allocation10 + $0x890] ss:$8 sps:$4 sm:$0xff]   ;;  %v6296_v59 = vld [vmem:[#allocation10 + $0x884] ss:$8 sps:$4 sm:$0xff]  }
 0x292   :  { %v4190_v6 = vpop.f32.mrf.mxu1  ;;  %4483 = vmatprep.subr.bf16.mxu1 %v6218_v21  ;;  %v4545_v8 = vmul.f32 %v5324_v62, %v4528_v2  ;;  %v6293_v21 = vld [vmem:[#allocation10 + $0x784] ss:$8 sps:$4 sm:$0xff]   ;;  %v6291_v60 = vld [vmem:[#allocation10 + $0x780] ss:$8 sps:$4 sm:$0xff]   ;;  %v5030_v62 = vcombine.low %v6803_v44, %v6803_v44 }
 0x293   :  { %v6294_v61 = vld [vmem:[#allocation10 + $0x880] ss:$8 sps:$4 sm:$0xff]  }
 0x294   :  { %4443 = vmatpush1.bf16.msra.mxu0 %v6213_v0  ;;  %4546 = vadd.xlane.f32.xlu0 %v4545_v8  ;;  %v5032_v0 = vcombine.low %v6805_v46, %v6805_v46 }
 0x295   :  { %4484 = vmatpush1.bf16.msra.mxu1 %v6216_v1  ;;  %4444 = vmatprep.subr.bf16.mxu0 %v6221_v7 }
 0x296   :  { %4485 = vmatprep.subr.bf16.mxu1 %v6224_v9 }
 0x298   :  { %4445 = vmatpush1.bf16.msra.mxu0 %v6219_v39 }
 0x299   :  { %4486 = vmatpush1.bf16.msra.mxu1 %v6222_v50  ;;  %4446 = vmatprep.subr.bf16.mxu0 %v6227_v45 }
 0x29a   :  { %4487 = vmatprep.subr.bf16.mxu1 %v6230_v51 }
 0x29c   :  { %4447 = vmatpush1.bf16.msra.mxu0 %v6225_v10 }
 0x29d   :  { %4488 = vmatpush1.bf16.msra.mxu1 %v6228_v11  ;;  %4448 = vmatprep.subr.bf16.mxu0 %v6233_v12 }
 0x29e   :  { %4489 = vmatprep.subr.bf16.mxu1 %v6236_v13 }
 0x2a0   :  { %4449 = vmatpush1.bf16.msra.mxu0 %v6231_v14 }
 0x2a1   :  { %4490 = vmatpush1.bf16.msra.mxu1 %v6234_v15  ;;  %4450 = vmatprep.subr.bf16.mxu0 %v6239_v16 }
 0x2a2   :  { %4491 = vmatprep.subr.bf16.mxu1 %v6242_v18 }
 0x2a4   :  { %4451 = vmatpush1.bf16.msra.mxu0 %v6237_v19 }
 0x2a5   :  { %4492 = vmatpush1.bf16.msra.mxu1 %v6240_v22  ;;  %4452 = vmatprep.subr.bf16.mxu0 %v6245_v25 }
 0x2a6   :  { %4493 = vmatprep.subr.bf16.mxu1 %v6248_v28 }
 0x2a8   :  { %4453 = vmatpush1.bf16.msra.mxu0 %v6243_v29 }
 0x2a9   :  { %4494 = vmatpush1.bf16.msra.mxu1 %v6246_v31  ;;  %4454 = vmatprep.subr.bf16.mxu0 %v6251_v20 }
 0x2aa   :  { %4495 = vmatprep.subr.bf16.mxu1 %v6254_v3 }
 0x2ac   :  { %4455 = vmatpush2.bf16.msra.mxu0 %v6249_v32 }
 0x2ad   :  { %4496 = vmatpush2.bf16.msra.mxu1 %v6252_v33  ;;  %4456 = vmatprep.subr.bf16.mxu0 %v6257_v34 }
 0x2ae   :  { %4497 = vmatprep.subr.bf16.mxu1 %v6260_v35 }
 0x2b0   :  { %4457 = vmatpush2.bf16.msra.mxu0 %v6255_v36 }
 0x2b1   :  { %4498 = vmatpush2.bf16.msra.mxu1 %v6258_v37  ;;  %4458 = vmatprep.subr.bf16.mxu0 %v6263_v26 }
 0x2b2   :  { %4499 = vmatprep.subr.bf16.mxu1 %v6266_v38 }
 0x2b4   :  { %4459 = vmatpush2.bf16.msra.mxu0 %v6261_v27  ;;  %v5323_v27 = vld [vmem:[#allocation13] ss:$0 sm:$0xff] }
 0x2b5   :  { %4500 = vmatpush2.bf16.msra.mxu1 %v6264_v41  ;;  %4460 = vmatprep.subr.bf16.mxu0 %v6269_v42 }
 0x2b6   :  { %4501 = vmatprep.subr.bf16.mxu1 %v6272_v43 }
 0x2b8   :  { %4461 = vmatpush2.bf16.msra.mxu0 %v6267_v47 }
 0x2b9   :  { %4502 = vmatpush2.bf16.msra.mxu1 %v6270_v48  ;;  %4462 = vmatprep.subr.bf16.mxu0 %v6275_v23 }
 0x2ba   :  { %4503 = vmatprep.subr.bf16.mxu1 %v6278_v49 }
 0x2bc   :  { %4463 = vmatpush2.bf16.msra.mxu0 %v6273_v17 }
 0x2bd   :  { %4504 = vmatpush2.bf16.msra.mxu1 %v6276_v63  ;;  %4464 = vmatprep.subr.bf16.mxu0 %v6281_v24 }
 0x2be   :  { %4505 = vmatprep.subr.bf16.mxu1 %v6284_v5  ;;  %v5326_v5 = vld [vmem:[#allocation18] ss:$0 sm:$0xff] }
 0x2c0   :  { %4465 = vmatpush2.bf16.msra.mxu0 %v6279_v53 }
 0x2c1   :  { %4506 = vmatpush2.bf16.msra.mxu1 %v6282_v54  ;;  %4466 = vmatprep.subr.bf16.mxu0 %v6287_v55 }
 0x2c2   :  { %4507 = vmatprep.subr.bf16.mxu1 %v6290_v56  ;;  %v6572_v56 = vmov 0  }
 0x2c3   :  { %5399 = vset.pattern.permute.xlu1 %v6572_v56  ;;  %5400 = vset.pattern.permute.xlu0 %v6572_v56 }
 0x2c4   :  { %4467 = vmatpush2.bf16.msra.mxu0 %v6285_v30  ;;  %v4611_v30 = vld [vmem:[#allocation19 + $0x78] sm:$0xff] }
 0x2c5   :  { %4508 = vmatpush2.bf16.msra.mxu1 %v6288_v4  ;;  %4468 = vmatprep.subr.bf16.mxu0 %v6293_v21  ;;  %v6573_v4 = vmov 0.0   ;;  %v4610_v21 = vld [vmem:[#allocation19 + $0x70] sm:$0xff] }
 0x2c6   :  { %4509 = vmatprep.subr.bf16.mxu1 %v6296_v59  ;;  %v4609_v59 = vld [vmem:[#allocation19 + $0x68] sm:$0xff] }
 0x2c8   :  { %4469 = vmatpush2.bf16.msra.mxu0 %v6291_v60  ;;  %v4608_v60 = vld [vmem:[#allocation19 + $0x60] sm:$0xff] }
 0x2c9   :  { %4510 = vmatpush2.bf16.msra.mxu1 %v6294_v61  ;;  %5347 = vmatprep.subr.mxu0 %v6573_v4  ;;  %v4607_v61 = vld [vmem:[#allocation19 + $0x58] sm:$0xff] }
 0x2cb   :  { %v4226_v1 = vpop.f32.mrf.mxu0  ;;  %4471 = vmatmul.mubr.bf16.vlgmr.msra.gmra.mxu0 %v5030_v62  ;;  %v4606_v62 = vld [vmem:[#allocation19 + $0x50] sm:$0xff] }
 0x2cc   :  { %v4267_v2 = vpop.f32.mrf.mxu1  ;;  %4512 = vmatmul.mubr.bf16.vlgmr.msra.gmra.mxu1 %v5032_v0  ;;  %v4227_v40 = vadd.f32 %v4226_v1, %v6812_v52  ;;  %5348 = vmatpush3.msra.mxu0 %v4611_v30  ;;  %v4605_v0 = vld [vmem:[#allocation19 + $0x48] sm:$0xff]  ;;  %v4604_v1 = vld [vmem:[#allocation19 + $0x40] sm:$0xff] }
 0x2cd   :  { %v4228_v6 = vpop.f32.mrf.mxu0  ;;  %5349 = vmatprep.subr.mxu0 %v6573_v4  ;;  %5379 = vmatprep.mubr.msk.f32.mxu0 %vm6574_vm0, %v6573_v4 }
 0x2ce   :  { %v4269_v7 = vpop.f32.mrf.mxu1  ;;  %v4268_v8 = vadd.f32 %v4267_v2, %v4227_v40  ;;  %v4229_v9 = vadd.f32 %v4228_v6, %v6814_v57  ;;  %5350 = vmatpush3.msra.mxu0 %v4610_v21  ;;  %v4603_v2 = vld [vmem:[#allocation19 + $0x38] sm:$0xff]  ;;  %v4602_v40 = vld [vmem:[#allocation19 + $0x30] sm:$0xff]  ;;  %v4601_v6 = vld [vmem:[#allocation19 + $0x28] sm:$0xff] }
 0x2cf   :  { %v4230_v39 = vpop.f32.mrf.mxu0  ;;  %5351 = vmatprep.subr.mxu0 %v6573_v4 }
 0x2d0   :  { %v4271_v50 = vpop.f32.mrf.mxu1  ;;  %v4270_v45 = vadd.f32 %v4269_v7, %v4229_v9  ;;  %5352 = vmatpush3.msra.mxu0 %v4609_v59  ;;  %v4600_v7 = vld [vmem:[#allocation19 + $0x20] sm:$0xff] }
 0x2d1   :  { %v4231_v44 = vpop.f32.mrf.mxu0  ;;  %5353 = vmatprep.subr.mxu0 %v6573_v4  ;;  %v5325_v9 = vld [vmem:[#allocation2] ss:$0 sm:$0xff]  ;;  %v5327_v39 = vld [vmem:[#allocation3] ss:$0 sm:$0xff] }
 0x2d2   :  { %v4272_v51 = vpop.f32.mrf.mxu1  ;;  %5354 = vmatpush3.msra.mxu0 %v4608_v60 }
 0x2d3   :  { %5355 = vmatprep.subr.mxu0 %v6573_v4 }
 0x2d4   :  { %5356 = vmatpush3.msra.mxu0 %v4607_v61 }
 0x2d5   :  { %5357 = vmatprep.subr.mxu0 %v6573_v4 }
 0x2d6   :  { %5358 = vmatpush3.msra.mxu0 %v4606_v62 }
 0x2d7   :  { %5359 = vmatprep.subr.mxu0 %v6573_v4 }
 0x2d8   :  { %5360 = vmatpush3.msra.mxu0 %v4605_v0 }
 0x2d9   :  { %5361 = vmatprep.subr.mxu0 %v6573_v4 }
 0x2da   :  { %5362 = vmatpush3.msra.mxu0 %v4604_v1 }
 0x2db   :  { %5363 = vmatprep.subr.mxu0 %v6573_v4 }
 0x2dc   :  { %5364 = vmatpush3.msra.mxu0 %v4603_v2 }
 0x2dd   :  { %5365 = vmatprep.subr.mxu0 %v6573_v4 }
 0x2de   :  { %5366 = vmatpush3.msra.mxu0 %v4602_v40 }
 0x2df   :  { %5367 = vmatprep.subr.mxu0 %v6573_v4 }
 0x2e0   :  { %5368 = vmatpush3.msra.mxu0 %v4601_v6 }
 0x2e1   :  { %5369 = vmatprep.subr.mxu0 %v6573_v4 }
 0x2e2   :  { %5370 = vmatpush3.msra.mxu0 %v4600_v7 }
 0x2e3   :  { %5371 = vmatprep.subr.mxu0 %v6573_v4 }
 0x30b   :  { %v4308_v10 = vpop.f32.mrf.mxu0 }
 0x30c   :  { %v4349_v46 = vpop.f32.mrf.mxu1  ;;  %v4309_v11 = vadd.f32 %v4308_v10, %v4268_v8 }
 0x30d   :  { %v4310_v12 = vpop.f32.mrf.mxu0 }
 0x30e   :  { %v4351_v13 = vpop.f32.mrf.mxu1  ;;  %v4350_v14 = vadd.f32 %v4349_v46, %v4309_v11  ;;  %v4311_v15 = vadd.f32 %v4310_v12, %v4270_v45  ;;  %v4599_v12 = vld [vmem:[#allocation19 + $0x18] sm:$0xff] }
 0x30f   :  { %v4312_v16 = vpop.f32.mrf.mxu0  ;;  %5372 = vmatpush3.msra.mxu0 %v4599_v12 }
 0x310   :  { %v4353_v18 = vpop.f32.mrf.mxu1  ;;  %v4352_v52 = vadd.f32 %v4351_v13, %v4311_v15  ;;  %5373 = vmatprep.subr.mxu0 %v6573_v4  ;;  %v4597_v15 = vld [vmem:[#allocation19 + $0x8] sm:$0xff]  ;;  %v4596_v16 = vld [vmem:[#allocation19] sm:$0xff] }
 0x311   :  { %v4313_v19 = vpop.f32.mrf.mxu0 }
 0x312   :  { %v4354_v22 = vpop.f32.mrf.mxu1  ;;  %v5328_v19 = vld [vmem:[#allocation15] ss:$0 sm:$0xff] }
 0x31d   :  { %v4547_v8 = vpop.xlane.xlu0 %4546 }
 0x31e   :  { %v4555_v45 = vadd.f32 %v5325_v9, %v4547_v8 }
 0x34b   :  { %v4390_v25 = vpop.f32.mrf.mxu0 }
 0x34c   :  { %v4431_v28 = vpop.f32.mrf.mxu1  ;;  %v4391_v35 = vadd.f32 %v4390_v25, %v4350_v14  ;;  %v4598_v14 = vld [vmem:[#allocation19 + $0x10] sm:$0xff] }
 0x34d   :  { %v4392_v57 = vpop.f32.mrf.mxu0  ;;  %5374 = vmatpush3.msra.mxu0 %v4598_v14 }
 0x34e   :  { %v4433_v29 = vpop.f32.mrf.mxu1  ;;  %v4393_v31 = vadd.f32 %v4392_v57, %v4352_v52  ;;  %v4432_v36 = vadd.f32 %v4431_v28, %v4391_v35  ;;  %5375 = vmatprep.subr.mxu0 %v6573_v4  ;;  %v5329_v57 = vld [vmem:[#allocation21] ss:$0 sm:$0xff] }
 0x34f   :  { %v4394_v20 = vpop.f32.mrf.mxu0  ;;  %5376 = vmatpush3.msra.mxu0 %v4597_v15 }
 0x350   :  { %v4435_v3 = vpop.f32.mrf.mxu1  ;;  %v4434_v32 = vadd.f32 %v4433_v29, %v4393_v31  ;;  %5377 = vmatprep.subr.mxu0 %v6573_v4 }
 0x351   :  { %v4395_v33 = vpop.f32.mrf.mxu0  ;;  %5378 = vmatpush3.msra.mxu0 %v4596_v16 }
 0x352   :  { %v4436_v34 = vpop.f32.mrf.mxu1 }
 0x38b   :  { %v4472_v37 = vpop.f32.mrf.mxu0 }
 0x38c   :  { %v4513_v26 = vpop.f32.mrf.mxu1  ;;  %v4473_v38 = vadd.f32 %v4472_v37, %v4432_v36 }
 0x38d   :  { %v4474_v41 = vpop.f32.mrf.mxu0 }
 0x38e   :  { %v4515_v42 = vpop.f32.mrf.mxu1  ;;  %v4514_v43 = vadd.f32 %v4513_v26, %v4473_v38  ;;  %v4475_v47 = vadd.f32 %v4474_v41, %v4434_v32 }
 0x38f   :  { %v4476_v48 = vpop.f32.mrf.mxu0 }
 0x390   :  { %v4517_v23 = vpop.f32.mrf.mxu1  ;;  %v4536_v49 = vadd.f32 %v5323_v27, %v4514_v43  ;;  %v6825_v17 = vadd.f32 %v4515_v42, %v4475_v47 }
 0x391   :  { %v4477_v63 = vpop.f32.mrf.mxu0 }
 0x392   :  { %v4518_v24 = vpop.f32.mrf.mxu1  ;;  %v4537_v53 = vmax.f32 %v4536_v49, 0.0  ;;  %v4579_v54 = vsub.f32 %v6817_v58, %v6825_v17 }
 0x394   :  { %v4563_v55 = vmul.f32 %v5326_v5, %v4537_v53 }
 0x396   :  { %4564 = vadd.xlane.f32.xlu0 %v4563_v55 }
 0x41f   :  { %v4565_v50 = vpop.xlane.xlu0 %4564 }
 0x420   :  { %v4573_v44 = vadd.f32 %v5327_v39, %v4565_v50 }
 0x422   :  { %v4574_v51 = vsub.f32 %v4573_v44, %v4555_v45 }
 0x424   :  { %v4575_v10 = vmul.f32 1.442695, %v4574_v51 }
 0x426   :  { %6301 = vpow2.f32 %v4575_v10 }
 0x433   :  { %v6302_v46 = vpop.eup %6301 }
 0x434   :  { %v4577_v11 = vadd.f32 1.0, %v6302_v46 }
 0x436   :  { %6303 = vrcp.f32 %v4577_v11 }
 0x443   :  { %v6304_v13 = vpop.eup %6303 }
 0x444   :  { %4582 = vperm.xlu1 %5399, %v6304_v13  }
 0x4bf   :  { %v4583_v18 = vpop.permute.xlu1 %4582 }
 0x4c0   :  { %v4585_v52 = vmul.f32 %v4583_v18, %v4579_v54 }
 0x4c2   :  { %v4586_v22 = vadd.f32 %v4585_v52, %v6825_v17 }
 0x4c4   :  { %v4594_v25 = vadd.f32 %v5328_v19, %v4586_v22 }
 0x4c6   :  { %v4595_v28 = vmax.f32 %v4594_v25, 0.0 }
 0x4c8   :  { %5380 = vmatmul.mubr.f32.vlgmr.msra.gmra.mxu0 %v4595_v28 }
 0x588   :  { %v4685_v29 = vpop.f32.mrf.mxu0 }
 0x589   :  { %v4686_v31 = vadd.f32 %v5329_v57, %v4685_v29 }
 0x58a   :  { %v5381_v20 = vpop.f32.mrf.mxu0 }
 0x58b   :  { %4689 = vst [vmem:[#allocation22] sm:$0xff] %v4686_v31 }
 0x58c   :  { %6536 = shalt.err (!%p6533_p3)
}
 0x58d   :  { %4699 = dma.vmem_to_hbm [thread:$0]  %s4697_s12, 128, %s6848_s13, [#allocation6]  }
 0x58e   :  { %6557 = dma.done.wait [#allocation6], 128  }
 0x58f   :  { %6558 = vsyncadd [#allocation6], 4294967168 }
 0x590   :  { %4703 = vsyncpa [#allocation5], 1 }
 0x591   :  { %4704 = vsyncpa [#allocation8], 1 }
 0x592   :  { %4705 = vsyncpa [#allocation11], 1 }
 0x593   :  { %4706 = vsyncpa [#allocation14], 1 }
 0x594   :  { %4707 = vsyncpa [#allocation17], 1 }
 0x595   :  { %4708 = vsyncpa [#allocation20], 1 }
 0x596   :  { %4709 = vsyncpa [#allocation6], 1 }

</bundles_post_ra>
